<compile_context>
chip_gen: v7x
topology: tpu7x:2x2x1
jax: 0.10.0
libtpu: 0.0.40
codegen_flags: <defaults>
</compile_context>

<pallas_src>
import jax
import jax.numpy as jnp
import numpy as np
from jax.experimental import pallas as pl
from jax.experimental.pallas import tpu as pltpu

GRID = 10            # board size
C_IN = 3
C1, C2 = 16, 32      # conv channels
P1S = GRID // 2      # spatial after pool1 (5)
P2S = P1S // 2       # spatial after pool2 (2, floor like nn.MaxPool2d(2,2))
S2 = P2S * P2S       # spatial positions after pool2 (4)
HID = 128            # LSTM hidden size
FC1 = 64
NUM_ACTIONS = 5
PAD = 8              # zero rows padded above/below pool1 in the shift scratch

_TAP_OFFSETS = tuple((dh, dw) for dh in (-1, 0, 1) for dw in (-1, 0, 1))
_CORNERS = ((0, 0), (0, 1), (1, 0), (1, 1))


def _vmem_spec():
    return pl.BlockSpec(memory_space=pltpu.MemorySpace.VMEM)


def _sigmoid(z):
    # Exact sigmoid (the previous approx reciprocal cost ~1e-2 abs error in gates).
    return 1.0 / (1.0 + jnp.exp(-z))


# ---------------------------------------------------------------------------
# The single fused kernel.
# ---------------------------------------------------------------------------
def crnn_fused_kernel(patches_ref, h0_ref, c0_ref, wconv_ref, mask_ref, g_ref,
                      wcat_ref, bias_ref, whead_ref,
                      q_ref, h_ref, c_ref, pad_ref):
    f32 = jnp.float32
    B = h0_ref.shape[0]
    n1p = pad_ref.shape[0] - 2 * PAD          # 8-aligned padded row count after pool1
    n2r = g_ref.shape[0] // 4                 # B * P2S * P2S

    # ---- conv1 (+bias+ReLU): one im2col matmul, rows grouped by pool parity.
    # wconv rows [0:32] = conv1 weight, K padded 27->32, out channels padded 16->32.
    y1 = jnp.dot(patches_ref[...], wconv_ref[0:32, :], preferred_element_type=f32)
    y1 = jnp.maximum(y1 + bias_ref[0:1, 0:32], 0.0)               # (4*n1p, 32)

    # ---- pool1: elementwise max over the 4 parity groups (8-aligned slices).
    pool1 = jnp.maximum(
        jnp.maximum(y1[0 * n1p:1 * n1p, :], y1[1 * n1p:2 * n1p, :]),
        jnp.maximum(y1[2 * n1p:3 * n1p, :], y1[3 * n1p:4 * n1p, :]))   # (n1p, 32)

    # ---- conv2: 9 taps read as shifted windows of a zero-padded VMEM scratch,
    # multiplied by host-precomputed boundary masks (no in-kernel iota/div/mod),
    # accumulated as 9 small matmuls.  Masks keep cross-batch / out-of-bounds
    # taps at zero, so the flat row shift is exact.
    pad_ref[...] = jnp.zeros_like(pad_ref)
    pad_ref[PAD:PAD + n1p, :] = pool1
    z2 = None
    for t, (dh, dw) in enumerate(_TAP_OFFSETS):
        s = dh * P1S + dw
        tap = (pad_ref[PAD + s:PAD + s + n1p, :]
               * mask_ref[t * n1p:(t + 1) * n1p, :])
        part = jnp.dot(tap, wconv_ref[32 + 32 * t:64 + 32 * t, :],
                       preferred_element_type=f32)
        z2 = part if z2 is None else z2 + part
    z2 = jnp.maximum(z2 + bias_ref[1:2, 0:32], 0.0)               # (n1p, C2)

    # ---- pool2 + flatten: 4 constant corner-gather matmuls (ride the MXU)
    # + 3 elementwise maxes.  pooled rows are ordered (spatial s, batch b).
    pooled = None
    for c in range(4):
        corner = jnp.dot(g_ref[c * n2r:(c + 1) * n2r, :], z2,
                         preferred_element_type=f32)              # (n2r, C2)
        pooled = corner if pooled is None else jnp.maximum(pooled, corner)

    # ---- LSTM cell (seq_len == 1).  The torch NCHW flatten is folded into 4
    # per-spatial-position input-weight blocks, so no sublane->lane packing.
    gates = bias_ref[2:3, :] + jnp.dot(
        h0_ref[...], wcat_ref[S2 * C2:S2 * C2 + HID, :], preferred_element_type=f32)
    for s in range(S2):
        xs = pooled[s * B:(s + 1) * B, :]                         # (B, C2)
        gates = gates + jnp.dot(xs, wcat_ref[s * C2:(s + 1) * C2, :],
                                preferred_element_type=f32)       # (B, 4*HID)

    i_g = _sigmoid(gates[:, 0:HID])
    f_g = _sigmoid(gates[:, HID:2 * HID])
    g_g = jnp.tanh(gates[:, 2 * HID:3 * HID])
    o_g = _sigmoid(gates[:, 3 * HID:4 * HID])
    c_new = f_g * c0_ref[...] + i_g * g_g
    h_new = o_g * jnp.tanh(c_new)

    # Attention over a length-1 sequence: softmax of a single score is exactly 1,
    # so the context vector equals h_new (dead score matmul removed).

    # ---- fc1 + ReLU + fc2 (output padded to 128 lanes for a dense store).
    y = jnp.maximum(
        jnp.dot(h_new, whead_ref[0:HID, 0:FC1], preferred_element_type=f32)
        + bias_ref[3:4, 0:FC1], 0.0)
    q_ref[...] = (jnp.dot(y, whead_ref[HID:HID + FC1, :],
                          preferred_element_type=f32) + bias_ref[4:5, 0:128])
    h_ref[...] = h_new
    c_ref[...] = c_new


# ---------------------------------------------------------------------------
# Host-side constant / input prep.
# ---------------------------------------------------------------------------
def _conv1_patches_grouped(x, n1p):
    """(B,3,H,W) -> (4*n1p, 32) conv1 im2col, rows grouped by 2x2 pool parity.

    Each parity group is zero-padded to n1p (8-aligned) rows; columns are in
    torch's (c_in, kh, kw) order (padded 27->32) to match conv1_w.reshape(16,-1).
    """
    B, C, H, W = x.shape
    n1 = B * (H // 2) * (W // 2)
    xp = jnp.pad(x, ((0, 0), (0, 0), (1, 1), (1, 1)))
    taps = jnp.stack([xp[:, :, kh:kh + H, kw:kw + W]
                      for kh in range(3) for kw in range(3)], axis=2)  # (B,C,9,H,W)
    p = taps.reshape(B, C * 9, H // 2, 2, W // 2, 2)     # (B,27,io,pi,jo,pj)
    p = jnp.transpose(p, (3, 5, 0, 2, 4, 1))             # (pi,pj,B,io,jo,27)
    p = p.reshape(4, n1, C * 9)
    p = jnp.pad(p, ((0, 0), (0, n1p - n1), (0, 32 - C * 9)))
    return p.reshape(4 * n1p, 32)


def _conv2_masks(B, n1p):
    """(9*n1p, 1) boundary-validity masks for the 9 conv2 taps (numpy constants)."""
    m = np.zeros((9 * n1p, 1), np.float32)
    for t, (dh, dw) in enumerate(_TAP_OFFSETS):
        for b in range(B):
            for i in range(P1S):
                for j in range(P1S):
                    if 0 <= i + dh < P1S and 0 <= j + dw < P1S:
                        m[t * n1p + b * P1S * P1S + i * P1S + j, 0] = 1.0
    return m


def _pool2_gather(B, n1p):
    """(4*n2r, n1p) 0/1 gather matrices: corner c of each 2x2 pool2 window.

    Output rows (within each corner block) are ordered (spatial s, batch b).
    """
    n2r = B * S2
    g = np.zeros((4, n2r, n1p), np.float32)
    for b in range(B):
        for i2 in range(P2S):
            for j2 in range(P2S):
                s = i2 * P2S + j2
                r = s * B + b
                for c, (di, dj) in enumerate(_CORNERS):
                    q = b * P1S * P1S + (2 * i2 + di) * P1S + (2 * j2 + dj)
                    g[c, r, q] = 1.0
    return g.reshape(4 * n2r, n1p)


# ---------------------------------------------------------------------------
# Parameters (deterministic PyTorch-like init) and one-time layout prep.
# ---------------------------------------------------------------------------
def init_params(key, grid_size=10, num_actions=5):
    ks = jax.random.split(key, 14)

    def u(k, shape, fan_in):
        bound = 1.0 / float(fan_in) ** 0.5
        return jax.random.uniform(k, shape, jnp.float32, -bound, bound)

    conv_out = 32 * (grid_size // 2 // 2) ** 2     # 128
    return {
        "conv1_w": u(ks[0], (16, 3, 3, 3), 3 * 9),
        "conv1_b": u(ks[1], (16,), 3 * 9),
        "conv2_w": u(ks[2], (32, 16, 3, 3), 16 * 9),
        "conv2_b": u(ks[3], (32,), 16 * 9),
        "w_ih":    u(ks[4], (4 * HID, conv_out), HID),
        "w_hh":    u(ks[5], (4 * HID, HID), HID),
        "b_ih":    u(ks[6], (4 * HID,), HID),
        "b_hh":    u(ks[7], (4 * HID,), HID),
        "wa":      u(ks[8], (1, HID), HID),        # attention (dead for seq_len==1)
        "ba":      u(ks[9], (1,), HID),
        "fc1_w":   u(ks[10], (FC1, HID), HID),
        "fc1_b":   u(ks[11], (FC1,), HID),
        "fc2_w":   u(ks[12], (num_actions, FC1), FC1),
        "fc2_b":   u(ks[13], (num_actions,), FC1),
    }


def prepare_params(params):
    """One-time weight packing/permutation, hoisted off the per-step path."""
    f32 = jnp.float32

    # conv slab: rows [0:32] = conv1 (K 27->32, out 16->32), rows [32+32t:64+32t]
    # = conv2 tap t with input channels padded 16->32.
    w1 = params["conv1_w"].reshape(C1, C_IN * 9).T                       # (27, 16)
    blocks = [jnp.zeros((32, 32), f32).at[:C_IN * 9, :C1].set(w1)]
    for (dh, dw) in _TAP_OFFSETS:
        blk = params["conv2_w"][:, :, dh + 1, dw + 1].T                  # (16, 32)
        blocks.append(jnp.zeros((32, 32), f32).at[:C1, :].set(blk))
    wconv = jnp.concatenate(blocks, axis=0)                              # (320, 32)

    # LSTM slab: 4 per-spatial input-weight blocks (torch flatten index c*4+s
    # folded in), then W_hh^T.
    w_ih = params["w_ih"]                                                # (512, 128)
    wx = [w_ih[:, s::S2].T for s in range(S2)]                           # 4 x (32, 512)
    wcat = jnp.concatenate(wx + [params["w_hh"].T], axis=0)              # (256, 512)

    # Bias slab (single DMA): rows = [b_conv1, b_conv2, b_lstm, b_fc1, b_fc2].
    bias = jnp.zeros((8, 4 * HID), f32)
    bias = bias.at[0, :C1].set(params["conv1_b"])
    bias = bias.at[1, :C2].set(params["conv2_b"])
    bias = bias.at[2, :].set(params["b_ih"] + params["b_hh"])
    bias = bias.at[3, :FC1].set(params["fc1_b"])
    bias = bias.at[4, :NUM_ACTIONS].set(params["fc2_b"])

    # FC head slab: rows [0:128] cols [0:64] = fc1^T; rows [128:192] = fc2^T
    # zero-padded to 128 lane-dense output columns.
    whead = jnp.zeros((HID + FC1, 128), f32)
    whead = whead.at[:HID, :FC1].set(params["fc1_w"].T)
    whead = whead.at[HID:, :NUM_ACTIONS].set(params["fc2_w"].T)

    return {"wconv": wconv, "wcat": wcat, "bias": bias, "whead": whead}


# ---------------------------------------------------------------------------
# Full forward pass (matches CRNN.forward: returns (q_values, (h_n, c_n))).
# ---------------------------------------------------------------------------
def crnn_forward(prep, x, hidden_state=None):
    B = x.shape[0]
    n1 = B * P1S * P1S
    n1p = ((n1 + 7) // 8) * 8                    # 8-aligned padded pool1 row count
    patches = _conv1_patches_grouped(x, n1p)
    masks = jnp.asarray(_conv2_masks(B, n1p))    # compile-time constants
    gmat = jnp.asarray(_pool2_gather(B, n1p))

    if hidden_state is None:
        h0 = jnp.zeros((B, HID), jnp.float32)
        c0 = jnp.zeros((B, HID), jnp.float32)
    else:
        h0 = hidden_state[0].reshape(B, HID)
        c0 = hidden_state[1].reshape(B, HID)

    q_pad, h, c = pl.pallas_call(
        crnn_fused_kernel,
        out_shape=(jax.ShapeDtypeStruct((B, 128), jnp.float32),
                   jax.ShapeDtypeStruct((B, HID), jnp.float32),
                   jax.ShapeDtypeStruct((B, HID), jnp.float32)),
        in_specs=[_vmem_spec() for _ in range(9)],
        out_specs=tuple(_vmem_spec() for _ in range(3)),
        scratch_shapes=[pltpu.VMEM((n1p + 2 * PAD, 32), jnp.float32)],
        input_output_aliases={1: 1, 2: 2},       # h0 -> h, c0 -> c (in-place state)
    )(patches, h0, c0,
      prep["wconv"], masks, gmat, prep["wcat"], prep["bias"], prep["whead"])

    q = q_pad[:, :NUM_ACTIONS]
    return q, (h[None, :, :], c[None, :, :])


# ---------------------------------------------------------------------------
# Pure-JAX reference of the PyTorch module (for correctness checking).
# ---------------------------------------------------------------------------
def crnn_reference(params, x, hidden_state=None):
    hp = jax.lax.Precision.HIGHEST
    B = x.shape[0]

    def conv(z, w, b):
        y = jax.lax.conv_general_dilated(
            z, w, (1, 1), ((1, 1), (1, 1)),
            dimension_numbers=("NCHW", "OIHW", "NCHW"), precision=hp)
        return jax.nn.relu(y + b[None, :, None, None])

    def pool(z):
        return jax.lax.reduce_window(z, -jnp.inf, jax.lax.max,
                                     (1, 1, 2, 2), (1, 1, 2, 2), "VALID")

    y = pool(conv(x, params["conv1_w"], params["conv1_b"]))
    y = pool(conv(y, params["conv2_w"], params["conv2_b"]))
    feat = y.reshape(B, -1)
    if hidden_state is None:
        h0 = jnp.zeros((B, HID), jnp.float32)
        c0 = jnp.zeros((B, HID), jnp.float32)
    else:
        h0 = hidden_state[0].reshape(B, HID)
        c0 = hidden_state[1].reshape(B, HID)
    gates = (jnp.dot(feat, params["w_ih"].T, precision=hp) + params["b_ih"]
             + jnp.dot(h0, params["w_hh"].T, precision=hp) + params["b_hh"])
    i = jax.nn.sigmoid(gates[:, :HID]); f = jax.nn.sigmoid(gates[:, HID:2 * HID])
    g = jnp.tanh(gates[:, 2 * HID:3 * HID]); o = jax.nn.sigmoid(gates[:, 3 * HID:])
    c = f * c0 + i * g
    h = o * jnp.tanh(c)
    # softmax over the length-1 sequence is 1 -> context == h
    yfc = jax.nn.relu(jnp.dot(h, params["fc1_w"].T, precision=hp) + params["fc1_b"])
    q = jnp.dot(yfc, params["fc2_w"].T, precision=hp) + params["fc2_b"]
    return q, (h[None], c[None])


if __name__ == "__main__":
    key = jax.random.PRNGKey(0)
    pkey, xkey = jax.random.split(key)
    params = init_params(pkey, grid_size=GRID, num_actions=NUM_ACTIONS)
    prep = prepare_params(params)                  # one-time weight layout prep

    # input: (batch=2, channels=3, 10, 10), as implied by the module
    x = jax.random.normal(xkey, (2, C_IN, GRID, GRID), jnp.float32)

    fwd = jax.jit(crnn_forward)
    q, (h_n, c_n) = fwd(prep, x)
    jax.block_until_ready((q, h_n, c_n))

    assert q.shape == (2, NUM_ACTIONS)
    assert h_n.shape == (1, 2, HID) and c_n.shape == (1, 2, HID)
    assert bool(jnp.all(jnp.isfinite(q)))

    # correctness vs. a pure-JAX reference of the PyTorch module
    q_r, (h_r, c_r) = crnn_reference(params, x)
    assert bool(jnp.allclose(h_n, h_r, atol=5e-3, rtol=0.0))
    assert bool(jnp.allclose(c_n, c_r, atol=5e-3, rtol=0.0))
    assert bool(jnp.allclose(q, q_r, atol=5e-3, rtol=0.0))

    # second step: feed the recurrent state back in (exercises hidden_state path)
    q2, (h2, c2) = fwd(prep, x, (h_n, c_n))
    jax.block_until_ready(q2)
    assert bool(jnp.all(jnp.isfinite(q2)))
    q2_r, (h2_r, c2_r) = crnn_reference(params, x, (h_r, c_r))
    assert bool(jnp.allclose(q2, q2_r, atol=5e-3, rtol=0.0))
    assert bool(jnp.allclose(h2, h2_r, atol=5e-3, rtol=0.0))

    print("KERNEL_OK")
</pallas_src>

<mosaic_0001>
module attributes {stable_mosaic.version = 11 : i64} {
  func.func @crnn_fused_kernel(%arg0: memref<224x32xf32, #tpu.memory_space<vmem>>, %arg1: memref<2x128xf32, #tpu.memory_space<vmem>>, %arg2: memref<2x128xf32, #tpu.memory_space<vmem>>, %arg3: memref<320x32xf32, #tpu.memory_space<vmem>>, %arg4: memref<504x1xf32, #tpu.memory_space<vmem>>, %arg5: memref<32x56xf32, #tpu.memory_space<vmem>>, %arg6: memref<256x512xf32, #tpu.memory_space<vmem>>, %arg7: memref<8x512xf32, #tpu.memory_space<vmem>>, %arg8: memref<192x128xf32, #tpu.memory_space<vmem>>, %arg9: memref<2x128xf32, #tpu.memory_space<vmem>>, %arg10: memref<2x128xf32, #tpu.memory_space<vmem>>, %arg11: memref<2x128xf32, #tpu.memory_space<vmem>>, %arg12: memref<72x32xf32, #tpu.memory_space<vmem>>) attributes {dimension_semantics = [], scalar_prefetch = 0 : i64, scratch_operands = 1 : i64, tpu.core_type = #tpu.core_type<tc>} {
    %c0 = arith.constant 0 : index
    %c0_0 = arith.constant 0 : index
    %0 = vector.load %arg0[%c0, %c0_0] : memref<224x32xf32, #tpu.memory_space<vmem>>, vector<224x32xf32>
    %c0_1 = arith.constant 0 : index
    %c0_2 = arith.constant 0 : index
    %1 = vector.load %arg3[%c0_1, %c0_2] : memref<320x32xf32, #tpu.memory_space<vmem>>, vector<32x32xf32>
    %cst = arith.constant dense<0.000000e+00> : vector<224x32xf32>
    %2 = tpu.matmul %0, %1, %cst {dimension_numbers = #tpu.dot_dimension_numbers<[1], [0], [0], [1], [0, 0, 1, 1], [], []>} : vector<224x32xf32>, vector<32x32xf32>, vector<224x32xf32> -> vector<224x32xf32>
    %c0_3 = arith.constant 0 : index
    %c0_4 = arith.constant 0 : index
    %3 = vector.load %arg7[%c0_3, %c0_4] : memref<8x512xf32, #tpu.memory_space<vmem>>, vector<1x32xf32>
    %4 = vector.broadcast %3 : vector<1x32xf32> to vector<224x32xf32>
    %5 = arith.addf %2, %4 : vector<224x32xf32>
    %cst_5 = arith.constant 0.000000e+00 : f32
    %6 = vector.broadcast %cst_5 : f32 to vector<224x32xf32>
    %7 = arith.maximumf %5, %6 : vector<224x32xf32>
    %8 = vector.extract_strided_slice %7 {offsets = [0, 0], sizes = [56, 32], strides = [1, 1]} : vector<224x32xf32> to vector<56x32xf32>
    %9 = vector.extract_strided_slice %7 {offsets = [56, 0], sizes = [56, 32], strides = [1, 1]} : vector<224x32xf32> to vector<56x32xf32>
    %10 = arith.maximumf %8, %9 : vector<56x32xf32>
    %11 = vector.extract_strided_slice %7 {offsets = [112, 0], sizes = [56, 32], strides = [1, 1]} : vector<224x32xf32> to vector<56x32xf32>
    %12 = vector.extract_strided_slice %7 {offsets = [168, 0], sizes = [56, 32], strides = [1, 1]} : vector<224x32xf32> to vector<56x32xf32>
    %13 = arith.maximumf %11, %12 : vector<56x32xf32>
    %14 = arith.maximumf %10, %13 : vector<56x32xf32>
    %cst_6 = arith.constant 0.000000e+00 : f32
    %15 = vector.broadcast %cst_6 : f32 to vector<72x32xf32>
    %c0_7 = arith.constant 0 : index
    %c0_8 = arith.constant 0 : index
    %16 = vector.load %arg12[%c0_7, %c0_8] : memref<72x32xf32, #tpu.memory_space<vmem>>, vector<72x32xf32>
    tpu.vector_store %arg12[%c0_7, %c0_8], %15 {strides = array<i32>} : memref<72x32xf32, #tpu.memory_space<vmem>>, vector<72x32xf32>,
    %c8 = arith.constant 8 : index
    %c0_9 = arith.constant 0 : index
    %17 = vector.load %arg12[%c8, %c0_9] : memref<72x32xf32, #tpu.memory_space<vmem>>, vector<56x32xf32>
    tpu.vector_store %arg12[%c8, %c0_9], %14 {strides = array<i32>} : memref<72x32xf32, #tpu.memory_space<vmem>>, vector<56x32xf32>,
    %c2 = arith.constant 2 : index
    %c0_10 = arith.constant 0 : index
    %18 = vector.load %arg12[%c2, %c0_10] : memref<72x32xf32, #tpu.memory_space<vmem>>, vector<56x32xf32>
    %c0_11 = arith.constant 0 : index
    %c0_12 = arith.constant 0 : index
    %19 = vector.load %arg4[%c0_11, %c0_12] : memref<504x1xf32, #tpu.memory_space<vmem>>, vector<56x1xf32>
    %20 = vector.broadcast %19 : vector<56x1xf32> to vector<56x32xf32>
    %21 = arith.mulf %18, %20 : vector<56x32xf32>
    %c32 = arith.constant 32 : index
    %c0_13 = arith.constant 0 : index
    %22 = vector.load %arg3[%c32, %c0_13] : memref<320x32xf32, #tpu.memory_space<vmem>>, vector<32x32xf32>
    %cst_14 = arith.constant dense<0.000000e+00> : vector<56x32xf32>
    %23 = tpu.matmul %21, %22, %cst_14 {dimension_numbers = #tpu.dot_dimension_numbers<[1], [0], [0], [1], [0, 0, 1, 1], [], []>} : vector<56x32xf32>, vector<32x32xf32>, vector<56x32xf32> -> vector<56x32xf32>
    %c3 = arith.constant 3 : index
    %c0_15 = arith.constant 0 : index
    %24 = vector.load %arg12[%c3, %c0_15] : memref<72x32xf32, #tpu.memory_space<vmem>>, vector<56x32xf32>
    %c56 = arith.constant 56 : index
    %c0_16 = arith.constant 0 : index
    %25 = vector.load %arg4[%c56, %c0_16] : memref<504x1xf32, #tpu.memory_space<vmem>>, vector<56x1xf32>
    %26 = vector.broadcast %25 : vector<56x1xf32> to vector<56x32xf32>
    %27 = arith.mulf %24, %26 : vector<56x32xf32>
    %c64 = arith.constant 64 : index
    %c0_17 = arith.constant 0 : index
    %28 = vector.load %arg3[%c64, %c0_17] : memref<320x32xf32, #tpu.memory_space<vmem>>, vector<32x32xf32>
    %cst_18 = arith.constant dense<0.000000e+00> : vector<56x32xf32>
    %29 = tpu.matmul %27, %28, %cst_18 {dimension_numbers = #tpu.dot_dimension_numbers<[1], [0], [0], [1], [0, 0, 1, 1], [], []>} : vector<56x32xf32>, vector<32x32xf32>, vector<56x32xf32> -> vector<56x32xf32>
    %30 = arith.addf %23, %29 : vector<56x32xf32>
    %c4 = arith.constant 4 : index
    %c0_19 = arith.constant 0 : index
    %31 = vector.load %arg12[%c4, %c0_19] : memref<72x32xf32, #tpu.memory_space<vmem>>, vector<56x32xf32>
    %c112 = arith.constant 112 : index
    %c0_20 = arith.constant 0 : index
    %32 = vector.load %arg4[%c112, %c0_20] : memref<504x1xf32, #tpu.memory_space<vmem>>, vector<56x1xf32>
    %33 = vector.broadcast %32 : vector<56x1xf32> to vector<56x32xf32>
    %34 = arith.mulf %31, %33 : vector<56x32xf32>
    %c96 = arith.constant 96 : index
    %c0_21 = arith.constant 0 : index
    %35 = vector.load %arg3[%c96, %c0_21] : memref<320x32xf32, #tpu.memory_space<vmem>>, vector<32x32xf32>
    %cst_22 = arith.constant dense<0.000000e+00> : vector<56x32xf32>
    %36 = tpu.matmul %34, %35, %cst_22 {dimension_numbers = #tpu.dot_dimension_numbers<[1], [0], [0], [1], [0, 0, 1, 1], [], []>} : vector<56x32xf32>, vector<32x32xf32>, vector<56x32xf32> -> vector<56x32xf32>
    %37 = arith.addf %30, %36 : vector<56x32xf32>
    %c7 = arith.constant 7 : index
    %c0_23 = arith.constant 0 : index
    %38 = vector.load %arg12[%c7, %c0_23] : memref<72x32xf32, #tpu.memory_space<vmem>>, vector<56x32xf32>
    %c168 = arith.constant 168 : index
    %c0_24 = arith.constant 0 : index
    %39 = vector.load %arg4[%c168, %c0_24] : memref<504x1xf32, #tpu.memory_space<vmem>>, vector<56x1xf32>
    %40 = vector.broadcast %39 : vector<56x1xf32> to vector<56x32xf32>
    %41 = arith.mulf %38, %40 : vector<56x32xf32>
    %c128 = arith.constant 128 : index
    %c0_25 = arith.constant 0 : index
    %42 = vector.load %arg3[%c128, %c0_25] : memref<320x32xf32, #tpu.memory_space<vmem>>, vector<32x32xf32>
    %cst_26 = arith.constant dense<0.000000e+00> : vector<56x32xf32>
    %43 = tpu.matmul %41, %42, %cst_26 {dimension_numbers = #tpu.dot_dimension_numbers<[1], [0], [0], [1], [0, 0, 1, 1], [], []>} : vector<56x32xf32>, vector<32x32xf32>, vector<56x32xf32> -> vector<56x32xf32>
    %44 = arith.addf %37, %43 : vector<56x32xf32>
    %c8_27 = arith.constant 8 : index
    %c0_28 = arith.constant 0 : index
    %45 = vector.load %arg12[%c8_27, %c0_28] : memref<72x32xf32, #tpu.memory_space<vmem>>, vector<56x32xf32>
    %c224 = arith.constant 224 : index
    %c0_29 = arith.constant 0 : index
    %46 = vector.load %arg4[%c224, %c0_29] : memref<504x1xf32, #tpu.memory_space<vmem>>, vector<56x1xf32>
    %47 = vector.broadcast %46 : vector<56x1xf32> to vector<56x32xf32>
    %48 = arith.mulf %45, %47 : vector<56x32xf32>
    %c160 = arith.constant 160 : index
    %c0_30 = arith.constant 0 : index
    %49 = vector.load %arg3[%c160, %c0_30] : memref<320x32xf32, #tpu.memory_space<vmem>>, vector<32x32xf32>
    %cst_31 = arith.constant dense<0.000000e+00> : vector<56x32xf32>
    %50 = tpu.matmul %48, %49, %cst_31 {dimension_numbers = #tpu.dot_dimension_numbers<[1], [0], [0], [1], [0, 0, 1, 1], [], []>} : vector<56x32xf32>, vector<32x32xf32>, vector<56x32xf32> -> vector<56x32xf32>
    %51 = arith.addf %44, %50 : vector<56x32xf32>
    %c9 = arith.constant 9 : index
    %c0_32 = arith.constant 0 : index
    %52 = vector.load %arg12[%c9, %c0_32] : memref<72x32xf32, #tpu.memory_space<vmem>>, vector<56x32xf32>
    %c280 = arith.constant 280 : index
    %c0_33 = arith.constant 0 : index
    %53 = vector.load %arg4[%c280, %c0_33] : memref<504x1xf32, #tpu.memory_space<vmem>>, vector<56x1xf32>
    %54 = vector.broadcast %53 : vector<56x1xf32> to vector<56x32xf32>
    %55 = arith.mulf %52, %54 : vector<56x32xf32>
    %c192 = arith.constant 192 : index
    %c0_34 = arith.constant 0 : index
    %56 = vector.load %arg3[%c192, %c0_34] : memref<320x32xf32, #tpu.memory_space<vmem>>, vector<32x32xf32>
    %cst_35 = arith.constant dense<0.000000e+00> : vector<56x32xf32>
    %57 = tpu.matmul %55, %56, %cst_35 {dimension_numbers = #tpu.dot_dimension_numbers<[1], [0], [0], [1], [0, 0, 1, 1], [], []>} : vector<56x32xf32>, vector<32x32xf32>, vector<56x32xf32> -> vector<56x32xf32>
    %58 = arith.addf %51, %57 : vector<56x32xf32>
    %c12 = arith.constant 12 : index
    %c0_36 = arith.constant 0 : index
    %59 = vector.load %arg12[%c12, %c0_36] : memref<72x32xf32, #tpu.memory_space<vmem>>, vector<56x32xf32>
    %c336 = arith.constant 336 : index
    %c0_37 = arith.constant 0 : index
    %60 = vector.load %arg4[%c336, %c0_37] : memref<504x1xf32, #tpu.memory_space<vmem>>, vector<56x1xf32>
    %61 = vector.broadcast %60 : vector<56x1xf32> to vector<56x32xf32>
    %62 = arith.mulf %59, %61 : vector<56x32xf32>
    %c224_38 = arith.constant 224 : index
    %c0_39 = arith.constant 0 : index
    %63 = vector.load %arg3[%c224_38, %c0_39] : memref<320x32xf32, #tpu.memory_space<vmem>>, vector<32x32xf32>
    %cst_40 = arith.constant dense<0.000000e+00> : vector<56x32xf32>
    %64 = tpu.matmul %62, %63, %cst_40 {dimension_numbers = #tpu.dot_dimension_numbers<[1], [0], [0], [1], [0, 0, 1, 1], [], []>} : vector<56x32xf32>, vector<32x32xf32>, vector<56x32xf32> -> vector<56x32xf32>
    %65 = arith.addf %58, %64 : vector<56x32xf32>
    %c13 = arith.constant 13 : index
    %c0_41 = arith.constant 0 : index
    %66 = vector.load %arg12[%c13, %c0_41] : memref<72x32xf32, #tpu.memory_space<vmem>>, vector<56x32xf32>
    %c392 = arith.constant 392 : index
    %c0_42 = arith.constant 0 : index
    %67 = vector.load %arg4[%c392, %c0_42] : memref<504x1xf32, #tpu.memory_space<vmem>>, vector<56x1xf32>
    %68 = vector.broadcast %67 : vector<56x1xf32> to vector<56x32xf32>
    %69 = arith.mulf %66, %68 : vector<56x32xf32>
    %c256 = arith.constant 256 : index
    %c0_43 = arith.constant 0 : index
    %70 = vector.load %arg3[%c256, %c0_43] : memref<320x32xf32, #tpu.memory_space<vmem>>, vector<32x32xf32>
    %cst_44 = arith.constant dense<0.000000e+00> : vector<56x32xf32>
    %71 = tpu.matmul %69, %70, %cst_44 {dimension_numbers = #tpu.dot_dimension_numbers<[1], [0], [0], [1], [0, 0, 1, 1], [], []>} : vector<56x32xf32>, vector<32x32xf32>, vector<56x32xf32> -> vector<56x32xf32>
    %72 = arith.addf %65, %71 : vector<56x32xf32>
    %c14 = arith.constant 14 : index
    %c0_45 = arith.constant 0 : index
    %73 = vector.load %arg12[%c14, %c0_45] : memref<72x32xf32, #tpu.memory_space<vmem>>, vector<56x32xf32>
    %c448 = arith.constant 448 : index
    %c0_46 = arith.constant 0 : index
    %74 = vector.load %arg4[%c448, %c0_46] : memref<504x1xf32, #tpu.memory_space<vmem>>, vector<56x1xf32>
    %75 = vector.broadcast %74 : vector<56x1xf32> to vector<56x32xf32>
    %76 = arith.mulf %73, %75 : vector<56x32xf32>
    %c288 = arith.constant 288 : index
    %c0_47 = arith.constant 0 : index
    %77 = vector.load %arg3[%c288, %c0_47] : memref<320x32xf32, #tpu.memory_space<vmem>>, vector<32x32xf32>
    %cst_48 = arith.constant dense<0.000000e+00> : vector<56x32xf32>
    %78 = tpu.matmul %76, %77, %cst_48 {dimension_numbers = #tpu.dot_dimension_numbers<[1], [0], [0], [1], [0, 0, 1, 1], [], []>} : vector<56x32xf32>, vector<32x32xf32>, vector<56x32xf32> -> vector<56x32xf32>
    %79 = arith.addf %72, %78 : vector<56x32xf32>
    %c1 = arith.constant 1 : index
    %c0_49 = arith.constant 0 : index
    %80 = vector.load %arg7[%c1, %c0_49] : memref<8x512xf32, #tpu.memory_space<vmem>>, vector<1x32xf32>
    %81 = vector.broadcast %80 : vector<1x32xf32> to vector<56x32xf32>
    %82 = arith.addf %79, %81 : vector<56x32xf32>
    %cst_50 = arith.constant 0.000000e+00 : f32
    %83 = vector.broadcast %cst_50 : f32 to vector<56x32xf32>
    %84 = arith.maximumf %82, %83 : vector<56x32xf32>
    %c0_51 = arith.constant 0 : index
    %c0_52 = arith.constant 0 : index
    %85 = vector.load %arg5[%c0_51, %c0_52] : memref<32x56xf32, #tpu.memory_space<vmem>>, vector<8x56xf32>
    %cst_53 = arith.constant dense<0.000000e+00> : vector<8x32xf32>
    %86 = tpu.matmul %85, %84, %cst_53 {dimension_numbers = #tpu.dot_dimension_numbers<[1], [0], [0], [1], [0, 0, 1, 1], [], []>} : vector<8x56xf32>, vector<56x32xf32>, vector<8x32xf32> -> vector<8x32xf32>
    %c8_54 = arith.constant 8 : index
    %c0_55 = arith.constant 0 : index
    %87 = vector.load %arg5[%c8_54, %c0_55] : memref<32x56xf32, #tpu.memory_space<vmem>>, vector<8x56xf32>
    %cst_56 = arith.constant dense<0.000000e+00> : vector<8x32xf32>
    %88 = tpu.matmul %87, %84, %cst_56 {dimension_numbers = #tpu.dot_dimension_numbers<[1], [0], [0], [1], [0, 0, 1, 1], [], []>} : vector<8x56xf32>, vector<56x32xf32>, vector<8x32xf32> -> vector<8x32xf32>
    %89 = arith.maximumf %86, %88 : vector<8x32xf32>
    %c16 = arith.constant 16 : index
    %c0_57 = arith.constant 0 : index
    %90 = vector.load %arg5[%c16, %c0_57] : memref<32x56xf32, #tpu.memory_space<vmem>>, vector<8x56xf32>
    %cst_58 = arith.constant dense<0.000000e+00> : vector<8x32xf32>
    %91 = tpu.matmul %90, %84, %cst_58 {dimension_numbers = #tpu.dot_dimension_numbers<[1], [0], [0], [1], [0, 0, 1, 1], [], []>} : vector<8x56xf32>, vector<56x32xf32>, vector<8x32xf32> -> vector<8x32xf32>
    %92 = arith.maximumf %89, %91 : vector<8x32xf32>
    %c24 = arith.constant 24 : index
    %c0_59 = arith.constant 0 : index
    %93 = vector.load %arg5[%c24, %c0_59] : memref<32x56xf32, #tpu.memory_space<vmem>>, vector<8x56xf32>
    %cst_60 = arith.constant dense<0.000000e+00> : vector<8x32xf32>
    %94 = tpu.matmul %93, %84, %cst_60 {dimension_numbers = #tpu.dot_dimension_numbers<[1], [0], [0], [1], [0, 0, 1, 1], [], []>} : vector<8x56xf32>, vector<56x32xf32>, vector<8x32xf32> -> vector<8x32xf32>
    %95 = arith.maximumf %92, %94 : vector<8x32xf32>
    %c2_61 = arith.constant 2 : index
    %c0_62 = arith.constant 0 : index
    %96 = vector.load %arg7[%c2_61, %c0_62] : memref<8x512xf32, #tpu.memory_space<vmem>>, vector<1x512xf32>
    %c0_63 = arith.constant 0 : index
    %c0_64 = arith.constant 0 : index
    %97 = vector.load %arg1[%c0_63, %c0_64] : memref<2x128xf32, #tpu.memory_space<vmem>>, vector<2x128xf32>
    %c128_65 = arith.constant 128 : index
    %c0_66 = arith.constant 0 : index
    %98 = vector.load %arg6[%c128_65, %c0_66] : memref<256x512xf32, #tpu.memory_space<vmem>>, vector<128x512xf32>
    %cst_67 = arith.constant dense<0.000000e+00> : vector<2x512xf32>
    %99 = tpu.matmul %97, %98, %cst_67 {dimension_numbers = #tpu.dot_dimension_numbers<[1], [0], [0], [1], [0, 0, 1, 1], [], []>} : vector<2x128xf32>, vector<128x512xf32>, vector<2x512xf32> -> vector<2x512xf32>
    %100 = vector.broadcast %96 : vector<1x512xf32> to vector<2x512xf32>
    %101 = arith.addf %100, %99 : vector<2x512xf32>
    %102 = vector.extract_strided_slice %95 {offsets = [0, 0], sizes = [2, 32], strides = [1, 1]} : vector<8x32xf32> to vector<2x32xf32>
    %c0_68 = arith.constant 0 : index
    %c0_69 = arith.constant 0 : index
    %103 = vector.load %arg6[%c0_68, %c0_69] : memref<256x512xf32, #tpu.memory_space<vmem>>, vector<32x512xf32>
    %cst_70 = arith.constant dense<0.000000e+00> : vector<2x512xf32>
    %104 = tpu.matmul %102, %103, %cst_70 {dimension_numbers = #tpu.dot_dimension_numbers<[1], [0], [0], [1], [0, 0, 1, 1], [], []>} : vector<2x32xf32>, vector<32x512xf32>, vector<2x512xf32> -> vector<2x512xf32>
    %105 = arith.addf %101, %104 : vector<2x512xf32>
    %106 = vector.extract_strided_slice %95 {offsets = [2, 0], sizes = [2, 32], strides = [1, 1]} : vector<8x32xf32> to vector<2x32xf32>
    %c32_71 = arith.constant 32 : index
    %c0_72 = arith.constant 0 : index
    %107 = vector.load %arg6[%c32_71, %c0_72] : memref<256x512xf32, #tpu.memory_space<vmem>>, vector<32x512xf32>
    %cst_73 = arith.constant dense<0.000000e+00> : vector<2x512xf32>
    %108 = tpu.matmul %106, %107, %cst_73 {dimension_numbers = #tpu.dot_dimension_numbers<[1], [0], [0], [1], [0, 0, 1, 1], [], []>} : vector<2x32xf32>, vector<32x512xf32>, vector<2x512xf32> -> vector<2x512xf32>
    %109 = arith.addf %105, %108 : vector<2x512xf32>
    %110 = vector.extract_strided_slice %95 {offsets = [4, 0], sizes = [2, 32], strides = [1, 1]} : vector<8x32xf32> to vector<2x32xf32>
    %c64_74 = arith.constant 64 : index
    %c0_75 = arith.constant 0 : index
    %111 = vector.load %arg6[%c64_74, %c0_75] : memref<256x512xf32, #tpu.memory_space<vmem>>, vector<32x512xf32>
    %cst_76 = arith.constant dense<0.000000e+00> : vector<2x512xf32>
    %112 = tpu.matmul %110, %111, %cst_76 {dimension_numbers = #tpu.dot_dimension_numbers<[1], [0], [0], [1], [0, 0, 1, 1], [], []>} : vector<2x32xf32>, vector<32x512xf32>, vector<2x512xf32> -> vector<2x512xf32>
    %113 = arith.addf %109, %112 : vector<2x512xf32>
    %114 = vector.extract_strided_slice %95 {offsets = [6, 0], sizes = [2, 32], strides = [1, 1]} : vector<8x32xf32> to vector<2x32xf32>
    %c96_77 = arith.constant 96 : index
    %c0_78 = arith.constant 0 : index
    %115 = vector.load %arg6[%c96_77, %c0_78] : memref<256x512xf32, #tpu.memory_space<vmem>>, vector<32x512xf32>
    %cst_79 = arith.constant dense<0.000000e+00> : vector<2x512xf32>
    %116 = tpu.matmul %114, %115, %cst_79 {dimension_numbers = #tpu.dot_dimension_numbers<[1], [0], [0], [1], [0, 0, 1, 1], [], []>} : vector<2x32xf32>, vector<32x512xf32>, vector<2x512xf32> -> vector<2x512xf32>
    %117 = arith.addf %113, %116 : vector<2x512xf32>
    %118 = vector.extract_strided_slice %117 {offsets = [0, 0], sizes = [2, 128], strides = [1, 1]} : vector<2x512xf32> to vector<2x128xf32>
    %cst_80 = arith.constant 0.000000e+00 : f32
    %119 = vector.broadcast %cst_80 : f32 to vector<2x128xf32>
    %120 = arith.subf %119, %118 : vector<2x128xf32>
    %121 = math.exp %120 : vector<2x128xf32>
    %cst_81 = arith.constant 1.000000e+00 : f32
    %122 = vector.broadcast %cst_81 : f32 to vector<2x128xf32>
    %123 = arith.addf %122, %121 : vector<2x128xf32>
    %cst_82 = arith.constant 1.000000e+00 : f32
    %124 = vector.broadcast %cst_82 : f32 to vector<2x128xf32>
    %125 = arith.divf %124, %123 : vector<2x128xf32>
    %126 = vector.extract_strided_slice %117 {offsets = [0, 128], sizes = [2, 128], strides = [1, 1]} : vector<2x512xf32> to vector<2x128xf32>
    %cst_83 = arith.constant 0.000000e+00 : f32
    %127 = vector.broadcast %cst_83 : f32 to vector<2x128xf32>
    %128 = arith.subf %127, %126 : vector<2x128xf32>
    %129 = math.exp %128 : vector<2x128xf32>
    %cst_84 = arith.constant 1.000000e+00 : f32
    %130 = vector.broadcast %cst_84 : f32 to vector<2x128xf32>
    %131 = arith.addf %130, %129 : vector<2x128xf32>
    %cst_85 = arith.constant 1.000000e+00 : f32
    %132 = vector.broadcast %cst_85 : f32 to vector<2x128xf32>
    %133 = arith.divf %132, %131 : vector<2x128xf32>
    %134 = vector.extract_strided_slice %117 {offsets = [0, 256], sizes = [2, 128], strides = [1, 1]} : vector<2x512xf32> to vector<2x128xf32>
    %135 = math.tanh %134 : vector<2x128xf32>
    %136 = vector.extract_strided_slice %117 {offsets = [0, 384], sizes = [2, 128], strides = [1, 1]} : vector<2x512xf32> to vector<2x128xf32>
    %cst_86 = arith.constant 0.000000e+00 : f32
    %137 = vector.broadcast %cst_86 : f32 to vector<2x128xf32>
    %138 = arith.subf %137, %136 : vector<2x128xf32>
    %139 = math.exp %138 : vector<2x128xf32>
    %cst_87 = arith.constant 1.000000e+00 : f32
    %140 = vector.broadcast %cst_87 : f32 to vector<2x128xf32>
    %141 = arith.addf %140, %139 : vector<2x128xf32>
    %cst_88 = arith.constant 1.000000e+00 : f32
    %142 = vector.broadcast %cst_88 : f32 to vector<2x128xf32>
    %143 = arith.divf %142, %141 : vector<2x128xf32>
    %c0_89 = arith.constant 0 : index
    %c0_90 = arith.constant 0 : index
    %144 = vector.load %arg2[%c0_89, %c0_90] : memref<2x128xf32, #tpu.memory_space<vmem>>, vector<2x128xf32>
    %145 = arith.mulf %133, %144 : vector<2x128xf32>
    %146 = arith.mulf %125, %135 : vector<2x128xf32>
    %147 = arith.addf %145, %146 : vector<2x128xf32>
    %148 = math.tanh %147 : vector<2x128xf32>
    %149 = arith.mulf %143, %148 : vector<2x128xf32>
    %c0_91 = arith.constant 0 : index
    %c0_92 = arith.constant 0 : index
    %150 = vector.load %arg8[%c0_91, %c0_92] : memref<192x128xf32, #tpu.memory_space<vmem>>, vector<128x64xf32>
    %cst_93 = arith.constant dense<0.000000e+00> : vector<2x64xf32>
    %151 = tpu.matmul %149, %150, %cst_93 {dimension_numbers = #tpu.dot_dimension_numbers<[1], [0], [0], [1], [0, 0, 1, 1], [], []>} : vector<2x128xf32>, vector<128x64xf32>, vector<2x64xf32> -> vector<2x64xf32>
    %c3_94 = arith.constant 3 : index
    %c0_95 = arith.constant 0 : index
    %152 = vector.load %arg7[%c3_94, %c0_95] : memref<8x512xf32, #tpu.memory_space<vmem>>, vector<1x64xf32>
    %153 = vector.broadcast %152 : vector<1x64xf32> to vector<2x64xf32>
    %154 = arith.addf %151, %153 : vector<2x64xf32>
    %cst_96 = arith.constant 0.000000e+00 : f32
    %155 = vector.broadcast %cst_96 : f32 to vector<2x64xf32>
    %156 = arith.maximumf %154, %155 : vector<2x64xf32>
    %c128_97 = arith.constant 128 : index
    %c0_98 = arith.constant 0 : index
    %157 = vector.load %arg8[%c128_97, %c0_98] : memref<192x128xf32, #tpu.memory_space<vmem>>, vector<64x128xf32>
    %cst_99 = arith.constant dense<0.000000e+00> : vector<2x128xf32>
    %158 = tpu.matmul %156, %157, %cst_99 {dimension_numbers = #tpu.dot_dimension_numbers<[1], [0], [0], [1], [0, 0, 1, 1], [], []>} : vector<2x64xf32>, vector<64x128xf32>, vector<2x128xf32> -> vector<2x128xf32>
    %c4_100 = arith.constant 4 : index
    %c0_101 = arith.constant 0 : index
    %159 = vector.load %arg7[%c4_100, %c0_101] : memref<8x512xf32, #tpu.memory_space<vmem>>, vector<1x128xf32>
    %160 = vector.broadcast %159 : vector<1x128xf32> to vector<2x128xf32>
    %161 = arith.addf %158, %160 : vector<2x128xf32>
    %c0_102 = arith.constant 0 : index
    %c0_103 = arith.constant 0 : index
    %162 = vector.load %arg9[%c0_102, %c0_103] : memref<2x128xf32, #tpu.memory_space<vmem>>, vector<2x128xf32>
    tpu.vector_store %arg9[%c0_102, %c0_103], %161 {strides = array<i32>} : memref<2x128xf32, #tpu.memory_space<vmem>>, vector<2x128xf32>,
    %c0_104 = arith.constant 0 : index
    %c0_105 = arith.constant 0 : index
    %163 = vector.load %arg10[%c0_104, %c0_105] : memref<2x128xf32, #tpu.memory_space<vmem>>, vector<2x128xf32>
    tpu.vector_store %arg10[%c0_104, %c0_105], %149 {strides = array<i32>} : memref<2x128xf32, #tpu.memory_space<vmem>>, vector<2x128xf32>,
    %c0_106 = arith.constant 0 : index
    %c0_107 = arith.constant 0 : index
    %164 = vector.load %arg11[%c0_106, %c0_107] : memref<2x128xf32, #tpu.memory_space<vmem>>, vector<2x128xf32>
    tpu.vector_store %arg11[%c0_106, %c0_107], %147 {strides = array<i32>} : memref<2x128xf32, #tpu.memory_space<vmem>>, vector<2x128xf32>,
    return
  }
}

</mosaic_0001>

<bundles_post_ra>
// kernel: crnn_forward.1
= control target key start
LH: loop header
LB: loop body
LE: loop exit
PB: predicated region body
PF: predicated region fallthrough
CT: control target
= control target key end

     0   :  { %vm69_vm0 = vcmask 261120   ;;  %v4592_v6 = vmov 0   ;;  %s6114_s0 = inlined_call_operand.vmem [shape: f32[224,32], index: 0, kind: input, shape index: {}]   ;;  %s6115_s1 = inlined_call_operand.vmem [shape: f32[2,128], index: 1, kind: input, shape index: {}, may-alias: {1,10}]   ;;  %s6116_s2 = inlined_call_operand.vmem [shape: f32[2,128], index: 2, kind: input, shape index: {}, may-alias: {2,11}]   ;;  %s6117_s3 = inlined_call_operand.vmem [shape: f32[320,32], index: 3, kind: input, shape index: {}]   ;;  %s6118_s4 = inlined_call_operand.vmem [shape: f32[504,1], index: 4, kind: input, shape index: {}]   ;;  %s6119_s5 = inlined_call_operand.vmem [shape: f32[32,56], index: 5, kind: input, shape index: {}]   ;;  %s6120_s6 = inlined_call_operand.vmem [shape: f32[256,512], index: 6, kind: input, shape index: {}]   ;;  %s6121_s7 = inlined_call_operand.vmem [shape: f32[8,512], index: 7, kind: input, shape index: {}]   ;;  %s6122_s8 = inlined_call_operand.vmem [shape: f32[192,128], index: 8, kind: input, shape index: {}]   ;;  %s6123_s9 = inlined_call_operand.hbm [shape: f32[2,128], index: 9, kind: output, shape index: {0}]   ;;  %s6124_s10 = inlined_call_operand.vmem [shape: f32[2,128], index: 10, kind: output, shape index: {1}, may-alias: {1,10}]   ;;  %s6125_s11 = inlined_call_operand.vmem [shape: f32[2,128], index: 11, kind: output, shape index: {2}, may-alias: {2,11}]  }
   0x1   :  { %v64_v0 = vld [vmem:[%s6117_s3] sm:$0xff]  ;;  %v65_v1 = vld [vmem:[%s6117_s3 + $0x8] sm:$0xff]  ;;  %v66_v2 = vld [vmem:[%s6117_s3 + $0x10] sm:$0xff]  ;;  %4550 = vset.pattern.permute.xlu0 %v4592_v6  ;;  %4551 = vset.pattern.permute.xlu1 %v4592_v6 }
   0x2   :  { %v4259_v3 = vpack.c.bf16 %v65_v1, %v64_v0  ;;  %v67_v4 = vld [vmem:[%s6117_s3 + $0x18] sm:$0xff]  ;;  %v36_v5 = vld [vmem:[%s6114_s0] sm:$0xff]  ;;  %v493_v9 = vld [vmem:[%s6118_s4 + $0x48] sm:$0xff] }
   0x3   :  { %v4263_v7 = vpack.c.bf16 %v67_v4, %v66_v2  ;;  %3834 = vmatprep.mubr.msk.f32.mxu0 %vm69_vm0, %v36_v5  ;;  %v491_v8 = vld [vmem:[%s6118_s4 + $0x38] sm:$0xff]  ;;  %510 = vperm.xlu1 %4551, %v493_v9   ;;  %v492_v10 = vld [vmem:[%s6118_s4 + $0x40] sm:$0xff]  ;;  %v494_v11 = vld [vmem:[%s6118_s4 + $0x50] sm:$0xff] }
   0x4   :  { %4260 = vmatprep.subr.bf16.mxu0 %v4259_v3  ;;  %4521 = vmatprep.subr.bf16.mxu1 %v4259_v3  ;;  %v37_v12 = vld [vmem:[%s6114_s0 + $0x8] sm:$0xff]  ;;  %v38_v13 = vld [vmem:[%s6114_s0 + $0x10] sm:$0xff]  ;;  %v60_v14 = vld [vmem:[%s6114_s0 + $0xc0] sm:$0xff] }
   0x5   :  { %4262 = vmatpush3.bf16.msra.mxu0 %v4259_v3  ;;  %4523 = vmatpush3.bf16.msra.mxu1 %v4259_v3  ;;  %v61_v15 = vld [vmem:[%s6114_s0 + $0xc8] sm:$0xff]  ;;  %v495_v16 = vld [vmem:[%s6118_s4 + $0x58] sm:$0xff]  ;;  %v496_v17 = vld [vmem:[%s6118_s4 + $0x60] sm:$0xff] }
   0x6   :  { %4264 = vmatprep.subr.bf16.mxu0 %v4263_v7  ;;  %500 = vperm.xlu0 %4550, %v491_v8   ;;  %v62_v18 = vld [vmem:[%s6114_s0 + $0xd0] sm:$0xff]  ;;  %v39_v19 = vld [vmem:[%s6114_s0 + $0x18] sm:$0xff]  ;;  %v40_v21 = vld [vmem:[%s6114_s0 + $0x20] sm:$0xff] }
   0x7   :  { %4522 = vmatprep.subr.bf16.mxu1 %v4263_v7  ;;  %515 = vperm.xlu1 %4551, %v494_v11   ;;  %v63_v20 = vld [vmem:[%s6114_s0 + $0xd8] sm:$0xff]  ;;  %v497_v22 = vld [vmem:[%s6118_s4 + $0x68] sm:$0xff]  ;;  %v431_v23 = vld [vmem:[%s6118_s4] sm:$0xff] }
   0x8   :  { %3870 = vmatprep.mubr.msk.f32.mxu1 %vm69_vm0, %v60_v14  ;;  %v41_v24 = vld [vmem:[%s6114_s0 + $0x28] sm:$0xff]  ;;  %v42_v25 = vld [vmem:[%s6114_s0 + $0x30] sm:$0xff]  ;;  %v43_v28 = vld [vmem:[%s6114_s0 + $0x38] sm:$0xff] }
   0x9   :  { %4266 = vmatpush3.bf16.msra.mxu0 %v4263_v7  ;;  %4524 = vmatpush3.bf16.msra.mxu1 %v4263_v7  ;;  %v793_v26 = vld [vmem:[%s6118_s4 + $0x70] sm:$0xff]  ;;  %v432_v27 = vld [vmem:[%s6118_s4 + $0x8] sm:$0xff]  ;;  %v44_v29 = vld [vmem:[%s6114_s0 + $0x40] sm:$0xff] }
   0xa   :  { %505 = vperm.xlu0 %4550, %v492_v10   ;;  %v794_v30 = vld [vmem:[%s6118_s4 + $0x78] sm:$0xff]  ;;  %v433_v31 = vld [vmem:[%s6118_s4 + $0x10] sm:$0xff]  ;;  %v45_v32 = vld [vmem:[%s6114_s0 + $0x48] sm:$0xff] }
   0xb   :  { %525 = vperm.xlu1 %4551, %v496_v17   ;;  %v46_v33 = vld [vmem:[%s6114_s0 + $0x50] sm:$0xff]  ;;  %v795_v34 = vld [vmem:[%s6118_s4 + $0x80] sm:$0xff]  ;;  %v434_v35 = vld [vmem:[%s6118_s4 + $0x18] sm:$0xff] }
   0xc   :  { %3835 = vmatmul.mubr.msk.f32.vlgmr.msra.gmra.mrb[0].mxu0 %vm69_vm0, %v37_v12  ;;  %3871 = vmatmul.mubr.msk.f32.vlgmr.msra.gmra.mrb[0].mxu1 %vm69_vm0, %v61_v15  ;;  %v47_v36 = vld [vmem:[%s6114_s0 + $0x58] sm:$0xff]  ;;  %v48_v37 = vld [vmem:[%s6114_s0 + $0x60] sm:$0xff]  ;;  %v796_v38 = vld [vmem:[%s6118_s4 + $0x88] sm:$0xff] }
   0xd   :  { %3837 = vmatprep.mubr.msk.f32.mxu0 %vm69_vm0, %v38_v13  ;;  %3873 = vmatprep.mubr.msk.f32.mxu1 %vm69_vm0, %v62_v18  ;;  %v435_v39 = vld [vmem:[%s6118_s4 + $0x20] sm:$0xff] }
   0xe   :  { %520 = vperm.xlu0 %4550, %v495_v16  }
   0xf   :  { %440 = vperm.xlu1 %4551, %v431_v23  }
  0x10   :  { %3838 = vmatmul.mubr.msk.f32.gmra.mrb[2].mxu0 %vm69_vm0, %v39_v19  ;;  %3874 = vmatmul.mubr.msk.f32.gmra.mrb[2].mxu1 %vm69_vm0, %v63_v20 }
  0x11   :  { %3840 = vmatprep.mubr.msk.f32.mxu0 %vm69_vm0, %v40_v21 }
  0x12   :  { %530 = vperm.xlu0 %4550, %v497_v22  }
  0x13   :  { %445 = vperm.xlu1 %4551, %v432_v27  }
  0x14   :  { %3841 = vmatmul.mubr.msk.f32.gmra.mrb[4].mxu0 %vm69_vm0, %v41_v24 }
  0x15   :  { %3843 = vmatprep.mubr.msk.f32.mxu0 %vm69_vm0, %v42_v25 }
  0x16   :  { %802 = vperm.xlu0 %4550, %v793_v26  }
  0x17   :  { %450 = vperm.xlu1 %4551, %v433_v31  }
  0x18   :  { %3844 = vmatmul.mubr.msk.f32.gmra.mrb[6].mxu0 %vm69_vm0, %v43_v28 }
  0x19   :  { %3846 = vmatprep.mubr.msk.f32.mxu0 %vm69_vm0, %v44_v29 }
  0x1a   :  { %807 = vperm.xlu0 %4550, %v794_v30  }
  0x1b   :  { %455 = vperm.xlu1 %4551, %v434_v35  }
  0x1c   :  { %3847 = vmatmul.mubr.msk.f32.gmra.mrb[8].mxu0 %vm69_vm0, %v45_v32 }
  0x1d   :  { %3849 = vmatprep.mubr.msk.f32.mxu0 %vm69_vm0, %v46_v33 }
  0x1e   :  { %812 = vperm.xlu0 %4550, %v795_v34  }
  0x20   :  { %3850 = vmatmul.mubr.msk.f32.gmra.mrb[10].mxu0 %vm69_vm0, %v47_v36 }
  0x21   :  { %17 = vsyncpa [#allocation4], 0  ;;  %3852 = vmatprep.mubr.msk.f32.mxu0 %vm69_vm0, %v48_v37  ;;  %v49_v40 = vld [vmem:[%s6114_s0 + $0x68] sm:$0xff]  ;;  %v50_v41 = vld [vmem:[%s6114_s0 + $0x70] sm:$0xff]  ;;  %460 = vperm.xlu1 %4551, %v435_v39   ;;  %v4593_v34 = vmov 0.0   ;;  %vm4595_vm1 = vmmov 0  }
  0x22   :  { %817 = vperm.xlu0 %4550, %v796_v38   ;;  %v797_v42 = vld [vmem:[%s6118_s4 + $0x90] sm:$0xff]  ;;  %v436_v43 = vld [vmem:[%s6118_s4 + $0x28] sm:$0xff]  ;;  %v51_v44 = vld [vmem:[%s6114_s0 + $0x78] sm:$0xff]  ;;  %412 = vst.msk [vmem:[#allocation2 + $0x20] sm:$0xff] %vm69_vm0, %v4593_v34  ;;  %3884 = vmatprep.mubr.msk.f32.mxu1 %vm4595_vm1, %v4593_v34  ;;  %vm2118_vm2 = vcmask 457728   ;;  %vm3433_vm3 = vcmask 523264  }
  0x23   :  { %v52_v45 = vld [vmem:[%s6114_s0 + $0x80] sm:$0xff]  ;;  %v798_v46 = vld [vmem:[%s6118_s4 + $0x98] sm:$0xff]  ;;  %v437_v47 = vld [vmem:[%s6118_s4 + $0x30] sm:$0xff]  ;;  %408 = vst.msk [vmem:[#allocation2] sm:$0xff] %vm69_vm0, %v4593_v34  ;;  %s4596_s18 = smov [#allocation3]  }
  0x24   :  { %3853 = vmatmul.mubr.msk.f32.gmra.mrb[12].mxu0 %vm69_vm0, %v49_v40  ;;  %v53_v48 = vld [vmem:[%s6114_s0 + $0x88] sm:$0xff]  ;;  %v54_v49 = vld [vmem:[%s6114_s0 + $0x90] sm:$0xff]  ;;  %v799_v50 = vld [vmem:[%s6118_s4 + $0xa0] sm:$0xff]  ;;  %409 = vst.msk [vmem:[#allocation2 + $0x8] sm:$0xff] %vm69_vm0, %v4593_v34  ;;  %v4594_v40 = vmov 0.0|0.0   ;;  %s3516_s19 = sshll.u32 %s4596_s18, 4  ;;  %s3517_s19 = int_to_ptr.vmem [resolvable:$true] %s3516_s19 }
  0x25   :  { %3855 = vmatprep.mubr.msk.f32.mxu0 %vm69_vm0, %v50_v41  ;;  %465 = vperm.xlu1 %4551, %v436_v43   ;;  %v981_v51 = vld [vmem:[%s6118_s4 + $0xa8] sm:$0xff]  ;;  %v55_v52 = vld [vmem:[%s6114_s0 + $0x98] sm:$0xff]  ;;  %v56_v53 = vld [vmem:[%s6114_s0 + $0xa0] sm:$0xff]  ;;  %410 = vst.msk [vmem:[#allocation2 + $0x10] sm:$0xff] %vm69_vm0, %v4593_v34  ;;  %p4573_p1 = scmp.lt.s32.totalorder %s3517_s19, %s3517_s19 }
  0x26   :  { %822 = vperm.xlu0 %4550, %v797_v42   ;;  %v1169_v54 = vld [vmem:[%s6118_s4 + $0xe0] sm:$0xff]  ;;  %v982_v55 = vld [vmem:[%s6118_s4 + $0xb0] sm:$0xff]  ;;  %v57_v56 = vld [vmem:[%s6114_s0 + $0xa8] sm:$0xff]  ;;  %411 = vst.msk [vmem:[#allocation2 + $0x18] sm:$0xff] %vm69_vm0, %v4593_v34  ;;  %4279 = vmatprep.subr.bf16.mxu0 %v4594_v40 }
  0x27   :  { %v58_v57 = vld [vmem:[%s6114_s0 + $0xb0] sm:$0xff]  ;;  %v1170_v58 = vld [vmem:[%s6118_s4 + $0xe8] sm:$0xff]  ;;  %v983_v59 = vld [vmem:[%s6118_s4 + $0xb8] sm:$0xff]  ;;  %413 = vst.msk [vmem:[#allocation2 + $0x28] sm:$0xff] %vm69_vm0, %v4593_v34  ;;  %4267 = vmatprep.subr.bf16.mxu1 %v4594_v40 }
  0x28   :  { %3856 = vmatmul.mubr.msk.f32.gmra.mrb[14].mxu0 %vm69_vm0, %v51_v44  ;;  %v59_v60 = vld [vmem:[%s6114_s0 + $0xb8] sm:$0xff]  ;;  %v1171_v61 = vld [vmem:[%s6118_s4 + $0xf0] sm:$0xff]  ;;  %v984_v62 = vld [vmem:[%s6118_s4 + $0xc0] sm:$0xff]  ;;  %414 = vst.msk [vmem:[#allocation2 + $0x30] sm:$0xff] %vm69_vm0, %v4593_v34 }
  0x29   :  { %3858 = vmatprep.mubr.msk.f32.mxu0 %vm69_vm0, %v52_v45  ;;  %470 = vperm.xlu1 %4551, %v437_v47   ;;  %v1172_v63 = vld [vmem:[%s6118_s4 + $0xf8] sm:$0xff]  ;;  %v985_v0 = vld [vmem:[%s6118_s4 + $0xc8] sm:$0xff]  ;;  %v1173_v1 = vld [vmem:[%s6118_s4 + $0x100] sm:$0xff]  ;;  %415 = vst.msk [vmem:[#allocation2 + $0x38] sm:$0xff] %vm69_vm0, %v4593_v34 }
  0x2a   :  { %827 = vperm.xlu0 %4550, %v798_v46   ;;  %v986_v2 = vld [vmem:[%s6118_s4 + $0xd0] sm:$0xff]  ;;  %v1174_v3 = vld [vmem:[%s6118_s4 + $0x108] sm:$0xff]  ;;  %v987_v4 = vld [vmem:[%s6118_s4 + $0xd8] sm:$0xff]  ;;  %416 = vst.msk [vmem:[#allocation2 + $0x40] sm:$0xff] %vm69_vm0, %v4593_v34 }
  0x2b   :  { %v1175_v5 = vld [vmem:[%s6118_s4 + $0x110] sm:$0xff]  ;;  %v1357_v6 = vld [vmem:[%s6118_s4 + $0x118] sm:$0xff]  ;;  %v1358_v8 = vld [vmem:[%s6118_s4 + $0x120] sm:$0xff] }
  0x2c   :  { %3859 = vmatmul.mubr.msk.f32.gmra.mrb[16].mxu0 %vm69_vm0, %v53_v48  ;;  %v1545_v7 = vld [vmem:[%s6118_s4 + $0x150] sm:$0xff]  ;;  %v1546_v9 = vld [vmem:[%s6118_s4 + $0x158] sm:$0xff]  ;;  %v1359_v10 = vld [vmem:[%s6118_s4 + $0x128] sm:$0xff] }
  0x2d   :  { %3861 = vmatprep.mubr.msk.f32.mxu0 %vm69_vm0, %v54_v49  ;;  %990 = vperm.xlu1 %4551, %v981_v51   ;;  %v1547_v11 = vld [vmem:[%s6118_s4 + $0x160] sm:$0xff]  ;;  %v1360_v12 = vld [vmem:[%s6118_s4 + $0x130] sm:$0xff]  ;;  %v1548_v13 = vld [vmem:[%s6118_s4 + $0x168] sm:$0xff] }
  0x2e   :  { %832 = vperm.xlu0 %4550, %v799_v50   ;;  %v1361_v14 = vld [vmem:[%s6118_s4 + $0x138] sm:$0xff]  ;;  %v1549_v15 = vld [vmem:[%s6118_s4 + $0x170] sm:$0xff]  ;;  %v1362_v16 = vld [vmem:[%s6118_s4 + $0x140] sm:$0xff] }
  0x2f   :  { %v1550_v17 = vld [vmem:[%s6118_s4 + $0x178] sm:$0xff]  ;;  %v1363_v18 = vld [vmem:[%s6118_s4 + $0x148] sm:$0xff]  ;;  %v1551_v19 = vld [vmem:[%s6118_s4 + $0x180] sm:$0xff] }
  0x30   :  { %3862 = vmatmul.mubr.msk.f32.gmra.mrb[18].mxu0 %vm69_vm0, %v55_v52  ;;  %v1733_v20 = vld [vmem:[%s6118_s4 + $0x188] sm:$0xff]  ;;  %v1921_v21 = vld [vmem:[%s6118_s4 + $0x1c0] sm:$0xff]  ;;  %v1734_v22 = vld [vmem:[%s6118_s4 + $0x190] sm:$0xff] }
  0x31   :  { %3864 = vmatprep.mubr.msk.f32.mxu0 %vm69_vm0, %v56_v53  ;;  %995 = vperm.xlu1 %4551, %v982_v55   ;;  %v1922_v23 = vld [vmem:[%s6118_s4 + $0x1c8] sm:$0xff]  ;;  %v1735_v24 = vld [vmem:[%s6118_s4 + $0x198] sm:$0xff]  ;;  %v1923_v25 = vld [vmem:[%s6118_s4 + $0x1d0] sm:$0xff] }
  0x32   :  { %1178 = vperm.xlu0 %4550, %v1169_v54   ;;  %v1736_v26 = vld [vmem:[%s6118_s4 + $0x1a0] sm:$0xff]  ;;  %v1924_v27 = vld [vmem:[%s6118_s4 + $0x1d8] sm:$0xff]  ;;  %v1737_v28 = vld [vmem:[%s6118_s4 + $0x1a8] sm:$0xff] }
  0x33   :  { %v1925_v29 = vld [vmem:[%s6118_s4 + $0x1e0] sm:$0xff]  ;;  %v1738_v30 = vld [vmem:[%s6118_s4 + $0x1b0] sm:$0xff]  ;;  %v1926_v31 = vld [vmem:[%s6118_s4 + $0x1e8] sm:$0xff] }
  0x34   :  { %3865 = vmatmul.mubr.msk.f32.gmra.mrb[20].mxu0 %vm69_vm0, %v57_v56  ;;  %v1739_v32 = vld [vmem:[%s6118_s4 + $0x1b8] sm:$0xff]  ;;  %v1927_v33 = vld [vmem:[%s6118_s4 + $0x1f0] sm:$0xff]  ;;  %v842_v35 = vld [vmem:[%s6117_s3 + $0x60] sm:$0xff] }
  0x35   :  { %3867 = vmatprep.mubr.msk.f32.mxu0 %vm69_vm0, %v58_v57  ;;  %1000 = vperm.xlu1 %4551, %v983_v59   ;;  %v843_v36 = vld [vmem:[%s6117_s3 + $0x68] sm:$0xff]  ;;  %v540_v37 = vld [vmem:[%s6117_s3 + $0x40] sm:$0xff]  ;;  %v542_v42 = vld [vmem:[%s6117_s3 + $0x50] sm:$0xff] }
  0x36   :  { %1183 = vperm.xlu0 %4550, %v1170_v58   ;;  %v4280_v38 = vpack.c.bf16 %v843_v36, %v842_v35  ;;  %v541_v39 = vld [vmem:[%s6117_s3 + $0x48] sm:$0xff]  ;;  %v543_v43 = vld [vmem:[%s6117_s3 + $0x58] sm:$0xff]  ;;  %v844_v44 = vld [vmem:[%s6117_s3 + $0x70] sm:$0xff] }
  0x37   :  { %v4268_v41 = vpack.c.bf16 %v541_v39, %v540_v37  ;;  %v4271_v45 = vpack.c.bf16 %v543_v43, %v542_v42  ;;  %v845_v46 = vld [vmem:[%s6117_s3 + $0x78] sm:$0xff] }
  0x38   :  { %3868 = vmatmul.mubr.msk.f32.gmra.mrb[22].mxu0 %vm69_vm0, %v59_v60  ;;  %v4283_v47 = vpack.c.bf16 %v845_v46, %v844_v44 }
  0x39   :  { %1005 = vperm.xlu1 %4551, %v984_v62   ;;  %4281 = vmatpush3.bf16.msra.mxu0 %v4280_v38  ;;  %v5043_v62 = vld [vmem:[%s6121_s7] ss:$0 sm:$0xff] }
  0x3a   :  { %1188 = vperm.xlu0 %4550, %v1171_v61   ;;  %4269 = vmatpush3.bf16.msra.mxu1 %v4268_v41 }
  0x3b   :  { %4282 = vmatprep.subr.bf16.mxu0 %v4594_v40  ;;  %4270 = vmatprep.subr.bf16.mxu1 %v4594_v40 }
  0x3c   :  { %3942 = vmatprep.mubr.msk.f32.mxu0 %vm4595_vm1, %v4593_v34 }
  0x3d   :  { %1010 = vperm.xlu1 %4551, %v985_v0   ;;  %4284 = vmatpush3.bf16.msra.mxu0 %v4283_v47 }
  0x3e   :  { %1193 = vperm.xlu0 %4550, %v1172_v63   ;;  %4272 = vmatpush3.bf16.msra.mxu1 %v4271_v45 }
  0x3f   :  { %4273 = vmatprep.subr.bf16.mxu1 %v4594_v40  ;;  %4291 = vmatprep.subr.bf16.mxu0 %v4594_v40 }
  0x41   :  { %1015 = vperm.xlu1 %4551, %v986_v2  }
  0x42   :  { %1198 = vperm.xlu0 %4550, %v1173_v1  }
  0x45   :  { %1020 = vperm.xlu1 %4551, %v987_v4  }
  0x46   :  { %1203 = vperm.xlu0 %4550, %v1174_v3  }
  0x49   :  { %1366 = vperm.xlu1 %4551, %v1357_v6  }
  0x4a   :  { %1208 = vperm.xlu0 %4550, %v1175_v5  }
  0x4d   :  { %1371 = vperm.xlu1 %4551, %v1358_v8  }
  0x4e   :  { %1554 = vperm.xlu0 %4550, %v1545_v7  }
  0x51   :  { %1376 = vperm.xlu1 %4551, %v1359_v10  }
  0x52   :  { %1559 = vperm.xlu0 %4550, %v1546_v9  }
  0x55   :  { %1381 = vperm.xlu1 %4551, %v1360_v12  }
  0x56   :  { %1564 = vperm.xlu0 %4550, %v1547_v11  }
  0x59   :  { %1386 = vperm.xlu1 %4551, %v1361_v14  }
  0x5a   :  { %1569 = vperm.xlu0 %4550, %v1548_v13  }
  0x5d   :  { %1391 = vperm.xlu1 %4551, %v1362_v16  }
  0x5e   :  { %1574 = vperm.xlu0 %4550, %v1549_v15  }
  0x61   :  { %1396 = vperm.xlu1 %4551, %v1363_v18  }
  0x62   :  { %1579 = vperm.xlu0 %4550, %v1550_v17  }
  0x65   :  { %1742 = vperm.xlu1 %4551, %v1733_v20  }
  0x66   :  { %1584 = vperm.xlu0 %4550, %v1551_v19  }
  0x69   :  { %1747 = vperm.xlu1 %4551, %v1734_v22  }
  0x6a   :  { %1930 = vperm.xlu0 %4550, %v1921_v21  }
  0x6d   :  { %1752 = vperm.xlu1 %4551, %v1735_v24  }
  0x6e   :  { %1935 = vperm.xlu0 %4550, %v1922_v23  }
  0x71   :  { %1757 = vperm.xlu1 %4551, %v1736_v26  }
  0x72   :  { %1940 = vperm.xlu0 %4550, %v1923_v25  }
  0x75   :  { %1762 = vperm.xlu1 %4551, %v1737_v28  }
  0x76   :  { %1945 = vperm.xlu0 %4550, %v1924_v27  }
  0x79   :  { %1767 = vperm.xlu1 %4551, %v1738_v30  }
  0x7a   :  { %1950 = vperm.xlu0 %4550, %v1925_v29  }
  0x7d   :  { %1772 = vperm.xlu1 %4551, %v1739_v32  }
  0x7e   :  { %1955 = vperm.xlu0 %4550, %v1926_v31  }
  0x82   :  { %1960 = vperm.xlu0 %4550, %v1927_v33   ;;  %v5045_v1 = vpop.permute.xlu1 %510 }
  0x85   :  { %v5022_v48 = vpop.permute.xlu0 %500 }
  0x86   :  { %v5053_v12 = vpop.permute.xlu1 %515 }
  0x89   :  { %v5024_v49 = vpop.permute.xlu0 %505 }
  0x8a   :  { %v5069_v30 = vpop.permute.xlu1 %525 }
  0x8d   :  { %v5026_v50 = vpop.permute.xlu0 %520 }
  0x91   :  { %v5028_v51 = vpop.permute.xlu0 %530 }
  0x95   :  { %v5030_v52 = vpop.permute.xlu0 %802 }
  0x99   :  { %v5038_v61 = vpop.permute.xlu0 %807 }
  0x9d   :  { %v5048_v4 = vpop.permute.xlu0 %812 }
  0xa1   :  { %v5059_v17 = vpop.permute.xlu0 %817 }
  0xa5   :  { %v5073_v39 = vpop.permute.xlu0 %822 }
  0xdf   :  { %v3836_v53 = vpop.f32.mrb[0].mxu0  ;;  %v5032_v54 = vpop.f32.mrb[0].mxu1 }
  0xe0   :  { %v220_v55 = vpop.f32.mrb[1].mxu0  ;;  %v340_v56 = vpop.f32.mrb[1].mxu1  ;;  %v226_v10 = vadd.f32 %v3836_v53, %v5043_v62 }
  0xe1   :  { %v221_v2 = vadd.f32 %v220_v55, %v5043_v62 }
  0xe2   :  { %v360_v21 = vmax.f32 %v226_v10, 0.0 }
  0xe3   :  { %v3839_v57 = vpop.f32.mrb[2].mxu0  ;;  %v5034_v58 = vpop.f32.mrb[2].mxu1  ;;  %v359_v7 = vmax.f32 %v221_v2, 0.0  ;;  %v341_v2 = vadd.f32 %v340_v56, %v5043_v62 }
  0xe4   :  { %v230_v59 = vpop.f32.mrb[3].mxu0  ;;  %v5036_v60 = vpop.f32.mrb[3].mxu1  ;;  %v236_v22 = vadd.f32 %v3839_v57, %v5043_v62 }
  0xe5   :  { %v231_v8 = vadd.f32 %v230_v59, %v5043_v62  ;;  %v5077_v59 = vpop.permute.xlu1 %440  ;;  %v351_v10 = vadd.f32 %v5036_v60, %v5043_v62 }
  0xe6   :  { %v362_v35 = vmax.f32 %v236_v22, 0.0 }
  0xe7   :  { %v3842_v63 = vpop.f32.mrb[4].mxu0  ;;  %v361_v18 = vmax.f32 %v231_v8, 0.0  ;;  %v383_v8 = vmax.f32 %v341_v2, 0.0 }
  0xe8   :  { %v240_v0 = vpop.f32.mrb[5].mxu0  ;;  %v246_v36 = vadd.f32 %v3842_v63, %v5043_v62 }
  0xe9   :  { %v241_v19 = vadd.f32 %v240_v0, %v5043_v62 }
  0xea   :  { %v364_v53 = vmax.f32 %v246_v36, 0.0 }
  0xeb   :  { %v3845_v3 = vpop.f32.mrb[6].mxu0  ;;  %v363_v31 = vmax.f32 %v241_v19, 0.0 }
  0xec   :  { %v256_v5 = vadd.f32 %v3845_v3, %v5043_v62  ;;  %v250_v6 = vpop.f32.mrb[7].mxu0 }
  0xed   :  { %v251_v32 = vadd.f32 %v250_v6, %v5043_v62 }
  0xee   :  { %v366_v9 = vmax.f32 %v256_v5, 0.0  ;;  %v5080_v5 = vpop.permute.xlu0 %827 }
  0xef   :  { %v3848_v11 = vpop.f32.mrb[8].mxu0  ;;  %v365_v46 = vmax.f32 %v251_v32, 0.0 }
  0xf0   :  { %v5055_v13 = vmax.f32 %v359_v7, %v366_v9  ;;  %v266_v14 = vadd.f32 %v3848_v11, %v5043_v62  ;;  %v260_v15 = vpop.f32.mrb[9].mxu0  ;;  %v346_v11 = vadd.f32 %v5032_v54, %v5043_v62 }
  0xf1   :  { %v261_v16 = vadd.f32 %v260_v15, %v5043_v62 }
  0xf2   :  { %v368_v20 = vmax.f32 %v266_v14, 0.0  ;;  %v5087_v14 = vpop.permute.xlu1 %445  ;;  %v384_v22 = vmax.f32 %v346_v11, 0.0 }
  0xf3   :  { %v367_v23 = vmax.f32 %v261_v16, 0.0  ;;  %v3851_v24 = vpop.f32.mrb[10].mxu0 }
  0xf4   :  { %v5063_v25 = vmax.f32 %v361_v18, %v368_v20  ;;  %v276_v26 = vadd.f32 %v3851_v24, %v5043_v62  ;;  %v270_v27 = vpop.f32.mrb[11].mxu0  ;;  %v5089_v18 = vpop.permute.xlu0 %832  ;;  %v385_v20 = vmax.f32 %v351_v10, 0.0 }
  0xf5   :  { %v5066_v28 = vmax.f32 %v360_v21, %v367_v23  ;;  %v271_v29 = vadd.f32 %v270_v27, %v5043_v62  ;;  %v356_v23 = vadd.f32 %v5034_v58, %v5043_v62 }
  0xf6   :  { %v370_v33 = vmax.f32 %v276_v26, 0.0 }
  0xf7   :  { %v369_v37 = vmax.f32 %v271_v29, 0.0  ;;  %v3854_v38 = vpop.f32.mrb[12].mxu0  ;;  %v386_v36 = vmax.f32 %v356_v23, 0.0 }
  0xf8   :  { %v391_v41 = vmax.f32 %v363_v31, %v370_v33  ;;  %v286_v42 = vadd.f32 %v3854_v38, %v5043_v62  ;;  %v280_v43 = vpop.f32.mrb[13].mxu0  ;;  %v5096_v31 = vpop.permute.xlu1 %450 }
  0xf9   :  { %v390_v44 = vmax.f32 %v362_v35, %v369_v37  ;;  %v281_v45 = vadd.f32 %v280_v43, %v5043_v62  ;;  %v5101_v38 = vpop.permute.xlu0 %1178 }
  0xfa   :  { %v372_v47 = vmax.f32 %v286_v42, 0.0 }
  0xfb   :  { %v371_v55 = vmax.f32 %v281_v45, 0.0  ;;  %v3857_v57 = vpop.f32.mrb[14].mxu0 }
  0xfc   :  { %v393_v0 = vmax.f32 %v365_v46, %v372_v47  ;;  %v290_v63 = vpop.f32.mrb[15].mxu0  ;;  %v296_v46 = vadd.f32 %v3857_v57, %v5043_v62  ;;  %v5109_v10 = vpop.permute.xlu1 %455 }
  0xfd   :  { %v392_v3 = vmax.f32 %v364_v53, %v371_v55  ;;  %v291_v24 = vadd.f32 %v290_v63, %v5043_v62 }
  0xff   :  { %v3860_v6 = vpop.f32.mrb[16].mxu0  ;;  %v373_v42 = vmax.f32 %v291_v24, 0.0 }
 0x100   :  { %v306_v7 = vadd.f32 %v3860_v6, %v5043_v62  ;;  %v300_v9 = vpop.f32.mrb[17].mxu0 }
 0x101   :  { %v301_v43 = vadd.f32 %v300_v9, %v5043_v62 }
 0x102   :  { %v376_v15 = vmax.f32 %v306_v7, 0.0 }
 0x103   :  { %v3863_v16 = vpop.f32.mrb[18].mxu0 }
 0x104   :  { %v397_v56 = vmax.f32 %v376_v15, %v383_v8  ;;  %v316_v19 = vadd.f32 %v3863_v16, %v5043_v62  ;;  %v310_v21 = vpop.f32.mrb[19].mxu0  ;;  %v5112_v16 = vpop.permute.xlu0 %1183 }
 0x105   :  { %v311_v60 = vadd.f32 %v310_v21, %v5043_v62  ;;  %v5118_v21 = vpop.permute.xlu1 %460 }
 0x106   :  { %v404_v54 = vmax.f32 %v390_v44, %v397_v56  ;;  %v378_v26 = vmax.f32 %v316_v19, 0.0 }
 0x107   :  { %v377_v27 = vmax.f32 %v311_v60, 0.0  ;;  %v3866_v29 = vpop.f32.mrb[20].mxu0 }
 0x108   :  { %420 = vst.msk [vmem:[#allocation2 + $0x20] sm:$0xff] %vm69_vm0, %v404_v54  ;;  %v399_v32 = vmax.f32 %v378_v26, %v385_v20  ;;  %v326_v33 = vadd.f32 %v3866_v29, %v5043_v62  ;;  %v320_v35 = vpop.f32.mrb[21].mxu0  ;;  %v482_v29 = vld [vmem:[%s6117_s3 + $0x30] sm:$0xff] }
 0x109   :  { %v398_v37 = vmax.f32 %v377_v27, %v384_v22  ;;  %v321_v58 = vadd.f32 %v320_v35, %v5043_v62  ;;  %v5134_v22 = vpop.permute.xlu0 %1188 }
 0x10a   :  { %v406_v44 = vmax.f32 %v392_v3, %v399_v32  ;;  %v380_v45 = vmax.f32 %v326_v33, 0.0  ;;  %v375_v3 = vmax.f32 %v301_v43, 0.0  ;;  %v483_v32 = vld [vmem:[%s6117_s3 + $0x38] sm:$0xff]  ;;  %v5144_v33 = vpop.permute.xlu1 %465 }
 0x10b   :  { %v405_v47 = vmax.f32 %v391_v41, %v398_v37  ;;  %v379_v53 = vmax.f32 %v321_v58, 0.0  ;;  %v3869_v55 = vpop.f32.mrb[22].mxu0  ;;  %v374_v41 = vmax.f32 %v296_v46, 0.0  ;;  %v4277_v58 = vpack.c.bf16 %v483_v32, %v482_v29 }
 0x10c   :  { %422 = vst.msk [vmem:[#allocation2 + $0x30] sm:$0xff] %vm69_vm0, %v406_v44  ;;  %v394_v63 = vmax.f32 %v373_v42, %v380_v45  ;;  %v336_v2 = vadd.f32 %v3869_v55, %v5043_v62  ;;  %v330_v6 = vpop.f32.mrb[23].mxu0 }
 0x10d   :  { %421 = vst.msk [vmem:[#allocation2 + $0x28] sm:$0xff] %vm69_vm0, %v405_v47  ;;  %v400_v7 = vmax.f32 %v379_v53, %v386_v36  ;;  %v331_v8 = vadd.f32 %v330_v6, %v5043_v62  ;;  %v5158_v35 = vpop.permute.xlu0 %1193 }
 0x10e   :  { %v401_v9 = vmax.f32 %v5055_v13, %v394_v63  ;;  %v382_v57 = vmax.f32 %v336_v2, 0.0  ;;  %v480_v13 = vld [vmem:[%s6117_s3 + $0x20] sm:$0xff]  ;;  %v5171_v47 = vpop.permute.xlu1 %470 }
 0x10f   :  { %v407_v11 = vmax.f32 %v393_v0, %v400_v7  ;;  %v381_v15 = vmax.f32 %v331_v8, 0.0  ;;  %v481_v0 = vld [vmem:[%s6117_s3 + $0x28] sm:$0xff] }
 0x110   :  { %417 = vst.msk [vmem:[#allocation2 + $0x8] sm:$0xff] %vm69_vm0, %v401_v9  ;;  %v396_v56 = vmax.f32 %v375_v3, %v382_v57  ;;  %v4274_v26 = vpack.c.bf16 %v481_v0, %v480_v13 }
 0x111   :  { %423 = vst.msk [vmem:[#allocation2 + $0x38] sm:$0xff] %vm69_vm0, %v407_v11  ;;  %v395_v19 = vmax.f32 %v374_v41, %v381_v15  ;;  %v5180_v53 = vpop.permute.xlu0 %1198 }
 0x112   :  { %v403_v20 = vmax.f32 %v5063_v25, %v396_v56  ;;  %v1218_v25 = vld [vmem:[%s6117_s3 + $0xa0] sm:$0xff]  ;;  %v5195_v2 = vpop.permute.xlu1 %990 }
 0x113   :  { %v402_v62 = vmax.f32 %v5066_v28, %v395_v19  ;;  %v1219_v28 = vld [vmem:[%s6117_s3 + $0xa8] sm:$0xff]  ;;  %v1030_v56 = vld [vmem:[%s6117_s3 + $0x80] sm:$0xff] }
 0x114   :  { %419 = vst.msk [vmem:[#allocation2 + $0x18] sm:$0xff] %vm69_vm0, %v403_v20  ;;  %v4292_v27 = vpack.c.bf16 %v1219_v28, %v1218_v25  ;;  %v488_v6 = vld [vmem:[#allocation2 + $0x23] sm:$0xff]  ;;  %v489_v3 = vld [vmem:[#allocation2 + $0x2b] sm:$0xff] }
 0x115   :  { %418 = vst.msk [vmem:[#allocation2 + $0x10] sm:$0xff] %vm69_vm0, %v402_v62  ;;  %v5197_v7 = vld [vmem:[#allocation2 + $0x24] sm:$0xff]  ;;  %v5201_v8 = vpop.permute.xlu0 %1203  ;;  %v5210_v9 = vld [vmem:[#allocation2 + $0x2c] sm:$0xff] }
 0x116   :  { %v5214_v57 = vpop.permute.xlu1 %995  ;;  %v1031_v19 = vld [vmem:[%s6117_s3 + $0x88] sm:$0xff]  ;;  %v1594_v20 = vld [vmem:[%s6117_s3 + $0xe0] sm:$0xff] }
 0x117   :  { %v484_v23 = vld [vmem:[#allocation2 + $0x3] sm:$0xff] }
 0x118   :  { %v786_v60 = vld [vmem:[#allocation2 + $0x4] sm:$0xff]  ;;  %v533_v24 = vmul.f32 %v5022_v48, %v484_v23  ;;  %v1220_v48 = vld [vmem:[%s6117_s3 + $0xb0] sm:$0xff]  ;;  %v4286_v23 = vpack.c.bf16 %v1031_v19, %v1030_v56 }
 0x119   :  { %v835_v54 = vmul.f32 %v5030_v52, %v786_v60  ;;  %v1221_v52 = vld [vmem:[%s6117_s3 + $0xb8] sm:$0xff]  ;;  %v5223_v41 = vpop.permute.xlu0 %1208  ;;  %v424_v13 = vld [vmem:[#allocation2 + $0x2] sm:$0xff] }
 0x11a   :  { %3885 = vmatmul.mubr.msk.f32.vlgmr.msra.gmra.mrb[4].mxu1 %vm69_vm0, %v533_v24  ;;  %v4295_v44 = vpack.c.bf16 %v1221_v52, %v1220_v48  ;;  %v490_v11 = vld [vmem:[#allocation2 + $0x33] sm:$0xff]  ;;  %v5245_v62 = vpop.permute.xlu1 %1000  ;;  %v1162_v0 = vld [vmem:[#allocation2 + $0x8] sm:$0xff]  ;;  %v473_v25 = vmul.f32 %v5077_v59, %v424_v13  ;;  %v1970_v19 = vld [vmem:[%s6117_s3 + $0x120] sm:$0xff] }
 0x11b   :  { %3943 = vmatmul.mubr.msk.f32.vlgmr.msra.gmra.mrb[24].mxu0 %vm69_vm0, %v835_v54  ;;  %3887 = vmatprep.mubr.msk.f32.mxu1 %vm4595_vm1, %v4593_v34  ;;  %v487_v55 = vld [vmem:[#allocation2 + $0x1b] sm:$0xff]  ;;  %v1211_v28 = vmul.f32 %v5101_v38, %v1162_v0  ;;  %v1032_v24 = vld [vmem:[%s6117_s3 + $0x90] sm:$0xff]  ;;  %v974_v56 = vld [vmem:[#allocation2 + $0x7] sm:$0xff] }
 0x11c   :  { %3945 = vmatprep.mubr.msk.f32.mxu0 %vm4595_vm1, %v4593_v34  ;;  %v485_v36 = vld [vmem:[#allocation2 + $0xb] sm:$0xff]  ;;  %4275 = vmatpush3.bf16.msra.mxu1 %v4274_v26  ;;  %v486_v45 = vld [vmem:[#allocation2 + $0x13] sm:$0xff]  ;;  %v5182_v63 = vld [vmem:[#allocation2 + $0x1c] sm:$0xff] }
 0x11d   :  { %v5160_v37 = vld [vmem:[#allocation2 + $0xc] sm:$0xff]  ;;  %4293 = vmatpush3.bf16.msra.mxu0 %v4292_v27  ;;  %v534_v42 = vmul.f32 %v5024_v49, %v485_v36  ;;  %4276 = vmatprep.subr.bf16.mxu1 %v4594_v40  ;;  %v5167_v46 = vld [vmem:[#allocation2 + $0x14] sm:$0xff]  ;;  %v535_v49 = vmul.f32 %v5045_v1, %v486_v45  ;;  %v536_v1 = vmul.f32 %v5053_v12, %v487_v55  ;;  %v428_v55 = vld [vmem:[#allocation2 + $0x22] sm:$0xff] }
 0x11e   :  { %v836_v43 = vmul.f32 %v5038_v61, %v5160_v37  ;;  %4294 = vmatprep.subr.bf16.mxu0 %v4594_v40  ;;  %v837_v61 = vmul.f32 %v5048_v4, %v5167_v46  ;;  %v838_v4 = vmul.f32 %v5059_v17, %v5182_v63  ;;  %v537_v12 = vmul.f32 %v5026_v50, %v488_v6  ;;  %v5225_v15 = vld [vmem:[#allocation2 + $0x34] sm:$0xff]  ;;  %v425_v27 = vld [vmem:[#allocation2 + $0xa] sm:$0xff]  ;;  %v5274_v38 = vpop.permute.xlu1 %1005 }
 0x11f   :  { %3888 = vmatmul.mubr.msk.f32.gmra.mrb[6].mxu1 %vm69_vm0, %v534_v42  ;;  %v839_v17 = vmul.f32 %v5073_v39, %v5197_v7  ;;  %v538_v50 = vmul.f32 %v5069_v30, %v489_v3  ;;  %v840_v39 = vmul.f32 %v5080_v5, %v5210_v9  ;;  %v539_v30 = vmul.f32 %v5028_v51, %v490_v11  ;;  %v1595_v51 = vld [vmem:[%s6117_s3 + $0xe8] sm:$0xff]  ;;  %v1033_v54 = vld [vmem:[%s6117_s3 + $0x98] sm:$0xff]  ;;  %v1596_v26 = vld [vmem:[%s6117_s3 + $0xf0] sm:$0xff] }
 0x120   :  { %3946 = vmatmul.mubr.msk.f32.gmra.mrb[26].mxu0 %vm69_vm0, %v836_v43  ;;  %3890 = vmatprep.mubr.msk.f32.mxu1 %vm4595_vm1, %v4593_v34  ;;  %v841_v5 = vmul.f32 %v5089_v18, %v5225_v15  ;;  %v5252_v18 = vpop.permute.xlu0 %1554  ;;  %v4304_v60 = vpack.c.bf16 %v1595_v51, %v1594_v20  ;;  %v1163_v29 = vld [vmem:[#allocation2 + $0x10] sm:$0xff]  ;;  %v1597_v59 = vld [vmem:[%s6117_s3 + $0xf8] sm:$0xff]  ;;  %v4289_v32 = vpack.c.bf16 %v1033_v54, %v1032_v24  ;;  %v1971_v20 = vld [vmem:[%s6117_s3 + $0x128] sm:$0xff] }
 0x121   :  { %3948 = vmatprep.mubr.msk.f32.mxu0 %vm4595_vm1, %v4593_v34  ;;  %4278 = vmatpush3.bf16.msra.mxu1 %v4277_v58  ;;  %v474_v48 = vmul.f32 %v5087_v14, %v425_v27  ;;  %v1212_v52 = vmul.f32 %v5112_v16, %v1163_v29  ;;  %v4307_v36 = vpack.c.bf16 %v1597_v59, %v1596_v26  ;;  %v426_v42 = vld [vmem:[#allocation2 + $0x12] sm:$0xff]  ;;  %v427_v45 = vld [vmem:[#allocation2 + $0x1a] sm:$0xff] }
 0x122   :  { %4296 = vmatpush3.bf16.msra.mxu0 %v4295_v44  ;;  %4285 = vmatprep.subr.bf16.mxu1 %v4594_v40  ;;  %v1164_v43 = vld [vmem:[#allocation2 + $0x18] sm:$0xff]  ;;  %v475_v14 = vmul.f32 %v5096_v31, %v426_v42  ;;  %v5294_v44 = vpop.permute.xlu1 %1010  ;;  %v476_v31 = vmul.f32 %v5109_v10, %v427_v45  ;;  %v477_v6 = vmul.f32 %v5118_v21, %v428_v55  ;;  %v1972_v24 = vld [vmem:[%s6117_s3 + $0x130] sm:$0xff] }
 0x123   :  { %4303 = vmatprep.subr.bf16.mxu0 %v4594_v40  ;;  %3891 = vmatmul.mubr.msk.f32.gmra.mrb[8].mxu1 %vm69_vm0, %v535_v49  ;;  %v1213_v16 = vmul.f32 %v5134_v22, %v1164_v43  ;;  %v1165_v49 = vld [vmem:[#allocation2 + $0x20] sm:$0xff]  ;;  %v1587_v13 = vmul.f32 %v5252_v18, %v5160_v37  ;;  %v4316_v51 = vpack.c.bf16 %v1971_v20, %v1970_v19  ;;  %v1973_v37 = vld [vmem:[%s6117_s3 + $0x138] sm:$0xff]  ;;  %v1914_v55 = vld [vmem:[#allocation2 + $0xe] sm:$0xff] }
 0x124   :  { %3949 = vmatmul.mubr.msk.f32.gmra.mrb[28].mxu0 %vm69_vm0, %v837_v61  ;;  %3893 = vmatprep.mubr.msk.f32.mxu1 %vm4595_vm1, %v4593_v34  ;;  %v5282_v58 = vpop.permute.xlu0 %1559  ;;  %v1214_v22 = vmul.f32 %v5158_v35, %v1165_v49  ;;  %v429_v35 = vld [vmem:[#allocation2 + $0x2a] sm:$0xff]  ;;  %v4319_v26 = vpack.c.bf16 %v1973_v37, %v1972_v24  ;;  %v976_v29 = vld [vmem:[#allocation2 + $0x17] sm:$0xff] }
 0x125   :  { %3951 = vmatprep.mubr.msk.f32.mxu0 %vm4595_vm1, %v4593_v34  ;;  %v478_v3 = vmul.f32 %v5144_v33, %v429_v35  ;;  %v1588_v54 = vmul.f32 %v5282_v58, %v5167_v46  ;;  %v1025_v46 = vmul.f32 %v5245_v62, %v976_v29  ;;  %v1917_v19 = vld [vmem:[#allocation2 + $0x26] sm:$0xff]  ;;  %v1919_v24 = vld [vmem:[#allocation2 + $0x36] sm:$0xff] }
 0x126   :  { %v1355_v37 = vld [vmem:[#allocation2 + $0x31] sm:$0xff]  ;;  %v1356_v29 = vld [vmem:[#allocation2 + $0x39] sm:$0xff] }
 0x127   :  { %3894 = vmatmul.mubr.msk.f32.gmra.mrb[10].mxu1 %vm69_vm0, %v536_v1  ;;  %v1166_v1 = vld [vmem:[#allocation2 + $0x28] sm:$0xff] }
 0x128   :  { %3952 = vmatmul.mubr.msk.f32.gmra.mrb[30].mxu0 %vm69_vm0, %v838_v4  ;;  %3896 = vmatprep.mubr.msk.f32.mxu1 %vm4595_vm1, %v4593_v34  ;;  %v5300_v61 = vpop.permute.xlu0 %1564  ;;  %v5310_v4 = vpop.permute.xlu1 %1015  ;;  %v1215_v10 = vmul.f32 %v5180_v53, %v1166_v1  ;;  %v430_v53 = vld [vmem:[#allocation2 + $0x32] sm:$0xff]  ;;  %v1783_v1 = vld [vmem:[%s6117_s3 + $0x108] sm:$0xff] }
 0x129   :  { %3954 = vmatprep.mubr.msk.f32.mxu0 %vm4595_vm1, %v4593_v34  ;;  %v479_v33 = vmul.f32 %v5171_v47, %v430_v53 }
 0x12b   :  { %3897 = vmatmul.mubr.msk.f32.gmra.mrb[12].mxu1 %vm69_vm0, %v537_v12 }
 0x12c   :  { %3955 = vmatmul.mubr.msk.f32.gmra.mrb[32].mxu0 %vm69_vm0, %v839_v17  ;;  %3899 = vmatprep.mubr.msk.f32.mxu1 %vm4595_vm1, %v4593_v34  ;;  %v5318_v12 = vpop.permute.xlu0 %1569  ;;  %v1167_v17 = vld [vmem:[#allocation2 + $0x30] sm:$0xff] }
 0x12d   :  { %3957 = vmatprep.mubr.msk.f32.mxu0 %vm4595_vm1, %v4593_v34  ;;  %v1216_v21 = vmul.f32 %v5201_v8, %v1167_v17  ;;  %v1590_v62 = vmul.f32 %v5318_v12, %v5197_v7  ;;  %v979_v7 = vld [vmem:[#allocation2 + $0x2f] sm:$0xff] }
 0x12e   :  { %v1784_v12 = vld [vmem:[%s6117_s3 + $0x110] sm:$0xff] }
 0x12f   :  { %3900 = vmatmul.mubr.msk.f32.gmra.mrb[14].mxu1 %vm69_vm0, %v538_v50  ;;  %v5328_v50 = vpop.permute.xlu1 %1020  ;;  %v1351_v17 = vld [vmem:[#allocation2 + $0x11] sm:$0xff] }
 0x130   :  { %3958 = vmatmul.mubr.msk.f32.gmra.mrb[34].mxu0 %vm69_vm0, %v840_v39  ;;  %3902 = vmatprep.mubr.msk.f32.mxu1 %vm4595_vm1, %v4593_v34  ;;  %v1168_v39 = vld [vmem:[#allocation2 + $0x38] sm:$0xff]  ;;  %v5332_v11 = vpop.permute.xlu0 %1574 }
 0x131   :  { %3960 = vmatprep.mubr.msk.f32.mxu0 %vm4595_vm1, %v4593_v34  ;;  %v1217_v8 = vmul.f32 %v5223_v41, %v1168_v39  ;;  %v1023_v41 = vmul.f32 %v5195_v2, %v974_v56 }
 0x133   :  { %3903 = vmatmul.mubr.msk.f32.gmra.mrb[16].mxu1 %vm69_vm0, %v539_v30  ;;  %v1406_v30 = vld [vmem:[%s6117_s3 + $0xc0] sm:$0xff]  ;;  %v5354_v47 = vpop.permute.xlu1 %1366 }
 0x134   :  { %3961 = vmatmul.mubr.msk.f32.gmra.mrb[36].mxu0 %vm69_vm0, %v841_v5  ;;  %3913 = vmatprep.mubr.msk.f32.mxu1 %vm4595_vm1, %v4593_v34  ;;  %v1407_v5 = vld [vmem:[%s6117_s3 + $0xc8] sm:$0xff] }
 0x135   :  { %4000 = vmatprep.mubr.msk.f32.mxu0 %vm4595_vm1, %v4593_v34  ;;  %v4298_v0 = vpack.c.bf16 %v1407_v5, %v1406_v30 }
 0x137   :  { %3914 = vmatmul.mubr.msk.f32.vlgmr.msra.gmra.mrb[18].mxu1 %vm69_vm0, %v473_v25  ;;  %v1408_v25 = vld [vmem:[%s6117_s3 + $0xd0] sm:$0xff]  ;;  %v5384_v27 = vpop.permute.xlu1 %1371 }
 0x138   :  { %4001 = vmatmul.mubr.msk.f32.vlgmr.msra.gmra.mrb[38].mxu0 %vm69_vm0, %v1211_v28  ;;  %3916 = vmatprep.mubr.msk.f32.mxu1 %vm4595_vm1, %v4593_v34  ;;  %v1409_v28 = vld [vmem:[%s6117_s3 + $0xd8] sm:$0xff]  ;;  %v1400_v53 = vmul.f32 %v5384_v27, %v1351_v17 }
 0x139   :  { %4003 = vmatprep.mubr.msk.f32.mxu0 %vm4595_vm1, %v4593_v34  ;;  %4287 = vmatpush3.bf16.msra.mxu1 %v4286_v23  ;;  %v1580_v23 = vpop.permute.xlu0 %1579  ;;  %v4301_v2 = vpack.c.bf16 %v1409_v28, %v1408_v25  ;;  %v1354_v25 = vld [vmem:[#allocation2 + $0x29] sm:$0xff]  ;;  %v1920_v27 = vld [vmem:[#allocation2 + $0x3e] sm:$0xff] }
 0x13a   :  { %4305 = vmatpush3.bf16.msra.mxu0 %v4304_v60  ;;  %4288 = vmatprep.subr.bf16.mxu1 %v4594_v40  ;;  %v975_v60 = vld [vmem:[#allocation2 + $0xf] sm:$0xff] }
 0x13b   :  { %4306 = vmatprep.subr.bf16.mxu0 %v4594_v40  ;;  %3917 = vmatmul.mubr.msk.f32.gmra.mrb[20].mxu1 %vm69_vm0, %v474_v48  ;;  %v1024_v18 = vmul.f32 %v5214_v57, %v975_v60  ;;  %v1589_v57 = vmul.f32 %v5300_v61, %v5182_v63  ;;  %v5401_v48 = vpop.permute.xlu1 %1376 }
 0x13c   :  { %4004 = vmatmul.mubr.msk.f32.gmra.mrb[40].mxu0 %vm69_vm0, %v1212_v52  ;;  %3919 = vmatprep.mubr.msk.f32.mxu1 %vm4595_vm1, %v4593_v34 }
 0x13d   :  { %4006 = vmatprep.mubr.msk.f32.mxu0 %vm4595_vm1, %v4593_v34  ;;  %4290 = vmatpush3.bf16.msra.mxu1 %v4289_v32  ;;  %v1585_v59 = vpop.permute.xlu0 %1584  ;;  %v977_v32 = vld [vmem:[#allocation2 + $0x1f] sm:$0xff] }
 0x13e   :  { %4308 = vmatpush3.bf16.msra.mxu0 %v4307_v36  ;;  %4297 = vmatprep.subr.bf16.mxu1 %v4594_v40  ;;  %v1026_v63 = vmul.f32 %v5274_v38, %v977_v32  ;;  %v978_v36 = vld [vmem:[#allocation2 + $0x27] sm:$0xff]  ;;  %v1591_v38 = vmul.f32 %v5332_v11, %v5210_v9  ;;  %v1544_v9 = vld [vmem:[#allocation2 + $0x3c] sm:$0xff] }
 0x13f   :  { %4315 = vmatprep.subr.bf16.mxu0 %v4594_v40  ;;  %3920 = vmatmul.mubr.msk.f32.gmra.mrb[22].mxu1 %vm69_vm0, %v475_v14  ;;  %v1027_v58 = vmul.f32 %v5294_v44, %v978_v36  ;;  %v5419_v42 = vpop.permute.xlu1 %1381  ;;  %v1028_v14 = vmul.f32 %v5310_v4, %v979_v7  ;;  %v980_v44 = vld [vmem:[#allocation2 + $0x37] sm:$0xff]  ;;  %v1593_v61 = vmul.f32 %v1585_v59, %v1544_v9  ;;  %v1726_v32 = vld [vmem:[#allocation2 + $0xd] sm:$0xff] }
 0x140   :  { %4007 = vmatmul.mubr.msk.f32.gmra.mrb[42].mxu0 %vm69_vm0, %v1213_v16  ;;  %3922 = vmatprep.mubr.msk.f32.mxu1 %vm4595_vm1, %v4593_v34  ;;  %v1592_v16 = vmul.f32 %v1580_v23, %v5225_v15  ;;  %v1029_v49 = vmul.f32 %v5328_v50, %v980_v44  ;;  %v1782_v15 = vld [vmem:[%s6117_s3 + $0x100] sm:$0xff]  ;;  %v1731_v44 = vld [vmem:[#allocation2 + $0x35] sm:$0xff] }
 0x141   :  { %4009 = vmatprep.mubr.msk.f32.mxu0 %vm4595_vm1, %v4593_v34  ;;  %v1931_v52 = vpop.permute.xlu0 %1930  ;;  %v1728_v36 = vld [vmem:[#allocation2 + $0x1d] sm:$0xff] }
 0x143   :  { %3923 = vmatmul.mubr.msk.f32.gmra.mrb[24].mxu1 %vm69_vm0, %v476_v31  ;;  %v1387_v45 = vpop.permute.xlu1 %1386 }
 0x144   :  { %4010 = vmatmul.mubr.msk.f32.gmra.mrb[44].mxu0 %vm69_vm0, %v1214_v22  ;;  %3925 = vmatprep.mubr.msk.f32.mxu1 %vm4595_vm1, %v4593_v34  ;;  %v1350_v22 = vld [vmem:[#allocation2 + $0x9] sm:$0xff]  ;;  %v1403_v60 = vmul.f32 %v1387_v45, %v1354_v25 }
 0x145   :  { %4012 = vmatprep.mubr.msk.f32.mxu0 %vm4595_vm1, %v4593_v34  ;;  %v1936_v43 = vpop.permute.xlu0 %1935  ;;  %v1399_v4 = vmul.f32 %v5354_v47, %v1350_v22  ;;  %v1353_v47 = vld [vmem:[#allocation2 + $0x21] sm:$0xff] }
 0x147   :  { %3926 = vmatmul.mubr.msk.f32.gmra.mrb[26].mxu1 %vm69_vm0, %v477_v6  ;;  %v1963_v6 = vmul.f32 %v1931_v52, %v1914_v55  ;;  %v1392_v35 = vpop.permute.xlu1 %1391 }
 0x148   :  { %4013 = vmatmul.mubr.msk.f32.gmra.mrb[46].mxu0 %vm69_vm0, %v1215_v10  ;;  %3928 = vmatprep.mubr.msk.f32.mxu1 %vm4595_vm1, %v4593_v34  ;;  %v4310_v10 = vpack.c.bf16 %v1783_v1, %v1782_v15 }
 0x149   :  { %4015 = vmatprep.mubr.msk.f32.mxu0 %vm4595_vm1, %v4593_v34  ;;  %v1941_v31 = vpop.permute.xlu0 %1940 }
 0x14b   :  { %3929 = vmatmul.mubr.msk.f32.gmra.mrb[28].mxu1 %vm69_vm0, %v478_v3  ;;  %v1915_v3 = vld [vmem:[#allocation2 + $0x16] sm:$0xff]  ;;  %v1397_v30 = vpop.permute.xlu1 %1396 }
 0x14c   :  { %4016 = vmatmul.mubr.msk.f32.gmra.mrb[48].mxu0 %vm69_vm0, %v1216_v21  ;;  %3931 = vmatprep.mubr.msk.f32.mxu1 %vm4595_vm1, %v4593_v34  ;;  %v1785_v21 = vld [vmem:[%s6117_s3 + $0x118] sm:$0xff]  ;;  %v1964_v39 = vmul.f32 %v1936_v43, %v1915_v3  ;;  %v1730_v43 = vld [vmem:[#allocation2 + $0x2d] sm:$0xff] }
 0x14d   :  { %4018 = vmatprep.mubr.msk.f32.mxu0 %vm4595_vm1, %v4593_v34  ;;  %v1946_v50 = vpop.permute.xlu0 %1945  ;;  %v4313_v11 = vpack.c.bf16 %v1785_v21, %v1784_v12 }
 0x14f   :  { %3932 = vmatmul.mubr.msk.f32.gmra.mrb[30].mxu1 %vm69_vm0, %v479_v33  ;;  %v1352_v33 = vld [vmem:[#allocation2 + $0x19] sm:$0xff] }
 0x150   :  { %4019 = vmatmul.mubr.msk.f32.gmra.mrb[50].mxu0 %vm69_vm0, %v1217_v8  ;;  %3971 = vmatprep.mubr.msk.f32.mxu1 %vm4595_vm1, %v4593_v34  ;;  %v1916_v8 = vld [vmem:[#allocation2 + $0x1e] sm:$0xff]  ;;  %v1401_v5 = vmul.f32 %v5401_v48, %v1352_v33 }
 0x151   :  { %4058 = vmatprep.mubr.msk.f32.mxu0 %vm4595_vm1, %v4593_v34  ;;  %v1965_v56 = vmul.f32 %v1941_v31, %v1916_v8  ;;  %v1951_v20 = vpop.permute.xlu0 %1950 }
 0x153   :  { %3972 = vmatmul.mubr.msk.f32.vlgmr.msra.gmra.mrb[32].mxu1 %vm69_vm0, %v1023_v41  ;;  %v1966_v41 = vmul.f32 %v1946_v50, %v1917_v19 }
 0x154   :  { %4059 = vmatmul.mubr.msk.f32.vlgmr.msra.gmra.mrb[52].mxu0 %vm69_vm0, %v1587_v13  ;;  %3974 = vmatprep.mubr.msk.f32.mxu1 %vm4595_vm1, %v4593_v34  ;;  %v1402_v13 = vmul.f32 %v5419_v42, %v1353_v47 }
 0x155   :  { %4061 = vmatprep.mubr.msk.f32.mxu0 %vm4595_vm1, %v4593_v34  ;;  %4299 = vmatpush3.bf16.msra.mxu1 %v4298_v0  ;;  %v1743_v0 = vpop.permute.xlu1 %1742  ;;  %v1956_v28 = vpop.permute.xlu0 %1955 }
 0x156   :  { %4317 = vmatpush3.bf16.msra.mxu0 %v4316_v51  ;;  %4300 = vmatprep.subr.bf16.mxu1 %v4594_v40  ;;  %v1918_v51 = vld [vmem:[#allocation2 + $0x2e] sm:$0xff]  ;;  %v1775_v48 = vmul.f32 %v1743_v0, %v1726_v32 }
 0x157   :  { %4318 = vmatprep.subr.bf16.mxu0 %v4594_v40  ;;  %3975 = vmatmul.mubr.msk.f32.gmra.mrb[34].mxu1 %vm69_vm0, %v1024_v18  ;;  %v1967_v23 = vmul.f32 %v1951_v20, %v1918_v51  ;;  %v1968_v18 = vmul.f32 %v1956_v28, %v1919_v24 }
 0x158   :  { %4062 = vmatmul.mubr.msk.f32.gmra.mrb[54].mxu0 %vm69_vm0, %v1588_v54  ;;  %3977 = vmatprep.mubr.msk.f32.mxu1 %vm4595_vm1, %v4593_v34  ;;  %v1404_v54 = vmul.f32 %v1392_v35, %v1355_v37 }
 0x159   :  { %4064 = vmatprep.mubr.msk.f32.mxu0 %vm4595_vm1, %v4593_v34  ;;  %4302 = vmatpush3.bf16.msra.mxu1 %v4301_v2  ;;  %v1748_v2 = vpop.permute.xlu1 %1747 }
 0x15a   :  { %4320 = vmatpush3.bf16.msra.mxu0 %v4319_v26  ;;  %4309 = vmatprep.subr.bf16.mxu1 %v4594_v40  ;;  %v1961_v26 = vpop.permute.xlu0 %1960 }
 0x15b   :  { %4339 = vmatprep.subr.bf16.mxu0 %v4594_v40  ;;  %3978 = vmatmul.mubr.msk.f32.gmra.mrb[36].mxu1 %vm69_vm0, %v1025_v46  ;;  %v1969_v59 = vmul.f32 %v1961_v26, %v1920_v27  ;;  %v1405_v46 = vmul.f32 %v1397_v30, %v1356_v29 }
 0x15c   :  { %4065 = vmatmul.mubr.msk.f32.gmra.mrb[56].mxu0 %vm69_vm0, %v1589_v57  ;;  %3980 = vmatprep.mubr.msk.f32.mxu1 %vm4595_vm1, %v4593_v34 }
 0x15d   :  { %4067 = vmatprep.mubr.msk.f32.mxu0 %vm4595_vm1, %v4593_v34  ;;  %v1753_v57 = vpop.permute.xlu1 %1752 }
 0x15f   :  { %3981 = vmatmul.mubr.msk.f32.gmra.mrb[38].mxu1 %vm69_vm0, %v1026_v63  ;;  %v1727_v63 = vld [vmem:[#allocation2 + $0x15] sm:$0xff] }
 0x160   :  { %4068 = vmatmul.mubr.msk.f32.gmra.mrb[58].mxu0 %vm69_vm0, %v1590_v62  ;;  %3983 = vmatprep.mubr.msk.f32.mxu1 %vm4595_vm1, %v4593_v34  ;;  %v1776_v52 = vmul.f32 %v1748_v2, %v1727_v63 }
 0x161   :  { %4070 = vmatprep.mubr.msk.f32.mxu0 %vm4595_vm1, %v4593_v34  ;;  %v1758_v62 = vpop.permute.xlu1 %1757 }
 0x163   :  { %3984 = vmatmul.mubr.msk.f32.gmra.mrb[40].mxu1 %vm69_vm0, %v1027_v58  ;;  %v1777_v58 = vmul.f32 %v1753_v57, %v1728_v36 }
 0x164   :  { %4071 = vmatmul.mubr.msk.f32.gmra.mrb[60].mxu0 %vm69_vm0, %v1591_v38  ;;  %3986 = vmatprep.mubr.msk.f32.mxu1 %vm4595_vm1, %v4593_v34  ;;  %v1729_v38 = vld [vmem:[#allocation2 + $0x25] sm:$0xff] }
 0x165   :  { %4073 = vmatprep.mubr.msk.f32.mxu0 %vm4595_vm1, %v4593_v34  ;;  %v1763_v42 = vpop.permute.xlu1 %1762  ;;  %v1778_v7 = vmul.f32 %v1758_v62, %v1729_v38 }
 0x167   :  { %3987 = vmatmul.mubr.msk.f32.gmra.mrb[42].mxu1 %vm69_vm0, %v1028_v14 }
 0x168   :  { %4074 = vmatmul.mubr.msk.f32.gmra.mrb[62].mxu0 %vm69_vm0, %v1592_v16  ;;  %3989 = vmatprep.mubr.msk.f32.mxu1 %vm4595_vm1, %v4593_v34  ;;  %v1779_v16 = vmul.f32 %v1763_v42, %v1730_v43 }
 0x169   :  { %4076 = vmatprep.mubr.msk.f32.mxu0 %vm4595_vm1, %v4593_v34  ;;  %v1768_v14 = vpop.permute.xlu1 %1767 }
 0x16a   :  { %v1780_v9 = vmul.f32 %v1768_v14, %v1731_v44 }
 0x16b   :  { %3990 = vmatmul.mubr.msk.f32.gmra.mrb[44].mxu1 %vm69_vm0, %v1029_v49  ;;  %v1732_v49 = vld [vmem:[#allocation2 + $0x3d] sm:$0xff] }
 0x16c   :  { %4077 = vmatmul.mubr.msk.f32.gmra.mrb[64].mxu0 %vm69_vm0, %v1593_v61  ;;  %4029 = vmatprep.mubr.msk.f32.mxu1 %vm4595_vm1, %v4593_v34 }
 0x16d   :  { %4116 = vmatprep.mubr.msk.f32.mxu0 %vm4595_vm1, %v4593_v34  ;;  %v1773_v45 = vpop.permute.xlu1 %1772 }
 0x16e   :  { %v1781_v61 = vmul.f32 %v1773_v45, %v1732_v49 }
 0x16f   :  { %4030 = vmatmul.mubr.msk.f32.vlgmr.msra.gmra.mrb[46].mxu1 %vm69_vm0, %v1399_v4 }
 0x170   :  { %4117 = vmatmul.mubr.msk.f32.vlgmr.msra.gmra.mrb[66].mxu0 %vm69_vm0, %v1963_v6  ;;  %4032 = vmatprep.mubr.msk.f32.mxu1 %vm4595_vm1, %v4593_v34 }
 0x171   :  { %4119 = vmatprep.mubr.msk.f32.mxu0 %vm4595_vm1, %v4593_v34  ;;  %4311 = vmatpush3.bf16.msra.mxu1 %v4310_v10 }
 0x172   :  { %4312 = vmatprep.subr.bf16.mxu1 %v4594_v40 }
 0x173   :  { %4033 = vmatmul.mubr.msk.f32.gmra.mrb[48].mxu1 %vm69_vm0, %v1400_v53 }
 0x174   :  { %4120 = vmatmul.mubr.msk.f32.gmra.mrb[68].mxu0 %vm69_vm0, %v1964_v39  ;;  %4035 = vmatprep.mubr.msk.f32.mxu1 %vm4595_vm1, %v4593_v34 }
 0x175   :  { %4122 = vmatprep.mubr.msk.f32.mxu0 %vm4595_vm1, %v4593_v34  ;;  %4314 = vmatpush3.bf16.msra.mxu1 %v4313_v11 }
 0x176   :  { %4321 = vmatprep.subr.bf16.mxu1 %v4594_v40 }
 0x177   :  { %4036 = vmatmul.mubr.msk.f32.gmra.mrb[50].mxu1 %vm69_vm0, %v1401_v5 }
 0x178   :  { %4123 = vmatmul.mubr.msk.f32.gmra.mrb[70].mxu0 %vm69_vm0, %v1965_v56  ;;  %4038 = vmatprep.mubr.msk.f32.mxu1 %vm4595_vm1, %v4593_v34 }
 0x179   :  { %4125 = vmatprep.mubr.msk.f32.mxu0 %vm4595_vm1, %v4593_v34 }
 0x17b   :  { %4039 = vmatmul.mubr.msk.f32.gmra.mrb[52].mxu1 %vm69_vm0, %v1402_v13 }
 0x17c   :  { %4126 = vmatmul.mubr.msk.f32.gmra.mrb[72].mxu0 %vm69_vm0, %v1966_v41  ;;  %4041 = vmatprep.mubr.msk.f32.mxu1 %vm4595_vm1, %v4593_v34 }
 0x17d   :  { %4128 = vmatprep.mubr.msk.f32.mxu0 %vm4595_vm1, %v4593_v34 }
 0x17f   :  { %4042 = vmatmul.mubr.msk.f32.gmra.mrb[54].mxu1 %vm69_vm0, %v1403_v60 }
 0x180   :  { %4129 = vmatmul.mubr.msk.f32.gmra.mrb[74].mxu0 %vm69_vm0, %v1967_v23  ;;  %4044 = vmatprep.mubr.msk.f32.mxu1 %vm4595_vm1, %v4593_v34 }
 0x181   :  { %4131 = vmatprep.mubr.msk.f32.mxu0 %vm4595_vm1, %v4593_v34 }
 0x183   :  { %4045 = vmatmul.mubr.msk.f32.gmra.mrb[56].mxu1 %vm69_vm0, %v1404_v54 }
 0x184   :  { %4132 = vmatmul.mubr.msk.f32.gmra.mrb[76].mxu0 %vm69_vm0, %v1968_v18  ;;  %4047 = vmatprep.mubr.msk.f32.mxu1 %vm4595_vm1, %v4593_v34 }
 0x185   :  { %4134 = vmatprep.mubr.msk.f32.mxu0 %vm4595_vm1, %v4593_v34 }
 0x187   :  { %4048 = vmatmul.mubr.msk.f32.gmra.mrb[58].mxu1 %vm69_vm0, %v1405_v46 }
 0x188   :  { %4135 = vmatmul.mubr.msk.f32.gmra.mrb[78].mxu0 %vm69_vm0, %v1969_v59  ;;  %4087 = vmatprep.mubr.msk.f32.mxu1 %vm4595_vm1, %v4593_v34 }
 0x189   :  { %4185 = vmatprep.mubr.msk.f32.mxu0 %vm4595_vm1, %v4593_v34 }
 0x18b   :  { %4088 = vmatmul.mubr.msk.f32.vlgmr.msra.gmra.mrb[60].mxu1 %vm69_vm0, %v1775_v48 }
 0x18c   :  { %4090 = vmatprep.mubr.msk.f32.mxu1 %vm4595_vm1, %v4593_v34 }
 0x18f   :  { %4091 = vmatmul.mubr.msk.f32.gmra.mrb[62].mxu1 %vm69_vm0, %v1776_v52 }
 0x190   :  { %4093 = vmatprep.mubr.msk.f32.mxu1 %vm4595_vm1, %v4593_v34 }
 0x193   :  { %4094 = vmatmul.mubr.msk.f32.gmra.mrb[64].mxu1 %vm69_vm0, %v1777_v58 }
 0x194   :  { %4096 = vmatprep.mubr.msk.f32.mxu1 %vm4595_vm1, %v4593_v34 }
 0x197   :  { %4097 = vmatmul.mubr.msk.f32.gmra.mrb[66].mxu1 %vm69_vm0, %v1778_v7 }
 0x198   :  { %4099 = vmatprep.mubr.msk.f32.mxu1 %vm4595_vm1, %v4593_v34 }
 0x19b   :  { %4100 = vmatmul.mubr.msk.f32.gmra.mrb[68].mxu1 %vm69_vm0, %v1779_v16 }
 0x19c   :  { %4102 = vmatprep.mubr.msk.f32.mxu1 %vm4595_vm1, %v4593_v34 }
 0x19f   :  { %4103 = vmatmul.mubr.msk.f32.gmra.mrb[70].mxu1 %vm69_vm0, %v1780_v9 }
 0x1a0   :  { %4105 = vmatprep.mubr.msk.f32.mxu1 %vm4595_vm1, %v4593_v34 }
 0x1a3   :  { %4106 = vmatmul.mubr.msk.f32.gmra.mrb[72].mxu1 %vm69_vm0, %v1781_v61 }
 0x1a4   :  { %4151 = vmatprep.mubr.msk.f32.mxu1 %vm4595_vm1, %v4593_v34 }
 0x1ed   :  { %v631_v15 = vpop.f32.mrb[4].mxu1 }
 0x1ee   :  { %v933_v31 = vpop.f32.mrb[24].mxu0  ;;  %v3886_v22 = vpop.f32.mrb[5].mxu1 }
 0x1ef   :  { %v3944_v55 = vpop.f32.mrb[25].mxu0 }
 0x1f2   :  { %v636_v1 = vpop.f32.mrb[6].mxu1 }
 0x1f3   :  { %v938_v4 = vpop.f32.mrb[26].mxu0  ;;  %v3889_v6 = vpop.f32.mrb[7].mxu1 }
 0x1f4   :  { %v3947_v10 = vpop.f32.mrb[27].mxu0 }
 0x1f6   :  { %v641_v12 = vpop.f32.mrb[8].mxu1 }
 0x1f7   :  { %v943_v35 = vpop.f32.mrb[28].mxu0  ;;  %v3892_v17 = vpop.f32.mrb[9].mxu1 }
 0x1f8   :  { %v3950_v3 = vpop.f32.mrb[29].mxu0 }
 0x1fa   :  { %v646_v21 = vpop.f32.mrb[10].mxu1 }
 0x1fb   :  { %v948_v50 = vpop.f32.mrb[30].mxu0  ;;  %v3895_v53 = vpop.f32.mrb[11].mxu1 }
 0x1fc   :  { %v3953_v39 = vpop.f32.mrb[31].mxu0 }
 0x1fe   :  { %v651_v11 = vpop.f32.mrb[12].mxu1 }
 0x1ff   :  { %v953_v33 = vpop.f32.mrb[32].mxu0  ;;  %v3898_v8 = vpop.f32.mrb[13].mxu1 }
 0x200   :  { %v3956_v30 = vpop.f32.mrb[33].mxu0 }
 0x202   :  { %v656_v5 = vpop.f32.mrb[14].mxu1 }
 0x203   :  { %v958_v56 = vpop.f32.mrb[34].mxu0  ;;  %v3901_v19 = vpop.f32.mrb[15].mxu1 }
 0x204   :  { %v3959_v20 = vpop.f32.mrb[35].mxu0 }
 0x206   :  { %v661_v47 = vpop.f32.mrb[16].mxu1 }
 0x207   :  { %v963_v41 = vpop.f32.mrb[36].mxu0  ;;  %v3904_v13 = vpop.f32.mrb[17].mxu1 }
 0x208   :  { %v3962_v0 = vpop.f32.mrb[37].mxu0 }
 0x20a   :  { %v752_v51 = vpop.f32.mrb[18].mxu1 }
 0x20b   :  { %v1309_v25 = vpop.f32.mrb[38].mxu0  ;;  %v753_v28 = vadd.f32 %v752_v51, %v631_v15  ;;  %v3915_v23 = vpop.f32.mrb[19].mxu1 }
 0x20c   :  { %v4002_v60 = vpop.f32.mrb[39].mxu0 }
 0x20d   :  { %v967_v24 = vadd.f32 %v933_v31, %v753_v28 }
 0x20e   :  { %v757_v37 = vpop.f32.mrb[20].mxu1 }
 0x20f   :  { %v1314_v2 = vpop.f32.mrb[40].mxu0  ;;  %v758_v18 = vadd.f32 %v757_v37, %v636_v1  ;;  %v3918_v54 = vpop.f32.mrb[21].mxu1 }
 0x210   :  { %v4005_v26 = vpop.f32.mrb[41].mxu0 }
 0x211   :  { %v968_v27 = vadd.f32 %v938_v4, %v758_v18 }
 0x212   :  { %v762_v29 = vpop.f32.mrb[22].mxu1 }
 0x213   :  { %v1319_v59 = vpop.f32.mrb[42].mxu0  ;;  %v763_v46 = vadd.f32 %v762_v29, %v641_v12  ;;  %v3921_v57 = vpop.f32.mrb[23].mxu1 }
 0x214   :  { %v4008_v32 = vpop.f32.mrb[43].mxu0 }
 0x215   :  { %v969_v48 = vadd.f32 %v943_v35, %v763_v46 }
 0x216   :  { %v767_v63 = vpop.f32.mrb[24].mxu1 }
 0x217   :  { %v1324_v62 = vpop.f32.mrb[44].mxu0  ;;  %v768_v52 = vadd.f32 %v767_v63, %v646_v21  ;;  %v3924_v36 = vpop.f32.mrb[25].mxu1 }
 0x218   :  { %v4011_v58 = vpop.f32.mrb[45].mxu0 }
 0x219   :  { %v970_v38 = vadd.f32 %v948_v50, %v768_v52 }
 0x21a   :  { %v772_v42 = vpop.f32.mrb[26].mxu1 }
 0x21b   :  { %v1329_v7 = vpop.f32.mrb[46].mxu0  ;;  %v773_v43 = vadd.f32 %v772_v42, %v651_v11  ;;  %v3927_v14 = vpop.f32.mrb[27].mxu1 }
 0x21c   :  { %v4014_v16 = vpop.f32.mrb[47].mxu0 }
 0x21d   :  { %v971_v44 = vadd.f32 %v953_v33, %v773_v43 }
 0x21e   :  { %v777_v9 = vpop.f32.mrb[28].mxu1 }
 0x21f   :  { %v1334_v45 = vpop.f32.mrb[48].mxu0  ;;  %v778_v49 = vadd.f32 %v777_v9, %v656_v5  ;;  %v3930_v61 = vpop.f32.mrb[29].mxu1 }
 0x220   :  { %v4017_v15 = vpop.f32.mrb[49].mxu0 }
 0x221   :  { %v972_v31 = vadd.f32 %v958_v56, %v778_v49 }
 0x222   :  { %v782_v22 = vpop.f32.mrb[30].mxu1 }
 0x223   :  { %v1339_v55 = vpop.f32.mrb[50].mxu0  ;;  %v783_v1 = vadd.f32 %v782_v22, %v661_v47  ;;  %v3933_v4 = vpop.f32.mrb[31].mxu1 }
 0x224   :  { %v4020_v6 = vpop.f32.mrb[51].mxu0 }
 0x225   :  { %v973_v10 = vadd.f32 %v963_v41, %v783_v1 }
 0x226   :  { %v1121_v12 = vpop.f32.mrb[32].mxu1 }
 0x227   :  { %v1685_v35 = vpop.f32.mrb[52].mxu0  ;;  %v1155_v17 = vadd.f32 %v1121_v12, %v967_v24  ;;  %v3973_v3 = vpop.f32.mrb[33].mxu1 }
 0x228   :  { %v4060_v21 = vpop.f32.mrb[53].mxu0 }
 0x229   :  { %v1343_v50 = vadd.f32 %v1309_v25, %v1155_v17 }
 0x22a   :  { %v1126_v53 = vpop.f32.mrb[34].mxu1 }
 0x22b   :  { %v1690_v39 = vpop.f32.mrb[54].mxu0  ;;  %v1156_v11 = vadd.f32 %v1126_v53, %v968_v27  ;;  %v3976_v33 = vpop.f32.mrb[35].mxu1 }
 0x22c   :  { %v4063_v8 = vpop.f32.mrb[55].mxu0 }
 0x22d   :  { %v1344_v30 = vadd.f32 %v1314_v2, %v1156_v11 }
 0x22e   :  { %v1131_v5 = vpop.f32.mrb[36].mxu1 }
 0x22f   :  { %v1695_v56 = vpop.f32.mrb[56].mxu0  ;;  %v1157_v19 = vadd.f32 %v1131_v5, %v969_v48  ;;  %v3979_v20 = vpop.f32.mrb[37].mxu1 }
 0x230   :  { %v4066_v47 = vpop.f32.mrb[57].mxu0 }
 0x231   :  { %v1345_v13 = vadd.f32 %v1319_v59, %v1157_v19 }
 0x232   :  { %v1136_v0 = vpop.f32.mrb[38].mxu1 }
 0x233   :  { %v1700_v41 = vpop.f32.mrb[58].mxu0  ;;  %v1158_v51 = vadd.f32 %v1136_v0, %v970_v38  ;;  %v3982_v28 = vpop.f32.mrb[39].mxu1 }
 0x234   :  { %v4069_v23 = vpop.f32.mrb[59].mxu0 }
 0x235   :  { %v1346_v60 = vadd.f32 %v1324_v62, %v1158_v51 }
 0x236   :  { %v1141_v24 = vpop.f32.mrb[40].mxu1 }
 0x237   :  { %v1705_v25 = vpop.f32.mrb[60].mxu0  ;;  %v1159_v37 = vadd.f32 %v1141_v24, %v971_v44  ;;  %v3985_v18 = vpop.f32.mrb[41].mxu1 }
 0x238   :  { %v4072_v54 = vpop.f32.mrb[61].mxu0 }
 0x239   :  { %v1347_v26 = vadd.f32 %v1329_v7, %v1159_v37 }
 0x23a   :  { %v1146_v27 = vpop.f32.mrb[42].mxu1 }
 0x23b   :  { %v1710_v2 = vpop.f32.mrb[62].mxu0  ;;  %v1160_v29 = vadd.f32 %v1146_v27, %v972_v31  ;;  %v3988_v46 = vpop.f32.mrb[43].mxu1 }
 0x23c   :  { %v4075_v57 = vpop.f32.mrb[63].mxu0 }
 0x23d   :  { %v1348_v32 = vadd.f32 %v1334_v45, %v1160_v29 }
 0x23e   :  { %v1151_v48 = vpop.f32.mrb[44].mxu1 }
 0x23f   :  { %v1715_v59 = vpop.f32.mrb[64].mxu0  ;;  %v1161_v63 = vadd.f32 %v1151_v48, %v973_v10  ;;  %v3991_v52 = vpop.f32.mrb[45].mxu1 }
 0x240   :  { %v4078_v36 = vpop.f32.mrb[65].mxu0 }
 0x241   :  { %v1349_v58 = vadd.f32 %v1339_v55, %v1161_v63 }
 0x242   :  { %v1497_v38 = vpop.f32.mrb[46].mxu1 }
 0x243   :  { %v2061_v62 = vpop.f32.mrb[66].mxu0  ;;  %v1531_v42 = vadd.f32 %v1497_v38, %v1343_v50  ;;  %v4031_v43 = vpop.f32.mrb[47].mxu1 }
 0x244   :  { %v4118_v14 = vpop.f32.mrb[67].mxu0 }
 0x245   :  { %v1719_v16 = vadd.f32 %v1685_v35, %v1531_v42 }
 0x246   :  { %v1502_v44 = vpop.f32.mrb[48].mxu1 }
 0x247   :  { %v2066_v7 = vpop.f32.mrb[68].mxu0  ;;  %v1532_v9 = vadd.f32 %v1502_v44, %v1344_v30  ;;  %v4034_v49 = vpop.f32.mrb[49].mxu1 }
 0x248   :  { %v4121_v61 = vpop.f32.mrb[69].mxu0 }
 0x249   :  { %v1720_v15 = vadd.f32 %v1690_v39, %v1532_v9 }
 0x24a   :  { %v1507_v31 = vpop.f32.mrb[50].mxu1 }
 0x24b   :  { %v2071_v45 = vpop.f32.mrb[70].mxu0  ;;  %v1533_v22 = vadd.f32 %v1507_v31, %v1345_v13  ;;  %v4037_v1 = vpop.f32.mrb[51].mxu1 }
 0x24c   :  { %v4124_v4 = vpop.f32.mrb[71].mxu0 }
 0x24d   :  { %v1721_v6 = vadd.f32 %v1695_v56, %v1533_v22 }
 0x24e   :  { %v1512_v10 = vpop.f32.mrb[52].mxu1 }
 0x24f   :  { %v2076_v55 = vpop.f32.mrb[72].mxu0  ;;  %v1534_v12 = vadd.f32 %v1512_v10, %v1346_v60  ;;  %v4040_v17 = vpop.f32.mrb[53].mxu1 }
 0x250   :  { %v4127_v3 = vpop.f32.mrb[73].mxu0 }
 0x251   :  { %v1722_v21 = vadd.f32 %v1700_v41, %v1534_v12 }
 0x252   :  { %v1517_v50 = vpop.f32.mrb[54].mxu1 }
 0x253   :  { %v2081_v35 = vpop.f32.mrb[74].mxu0  ;;  %v1535_v53 = vadd.f32 %v1517_v50, %v1347_v26  ;;  %v4043_v11 = vpop.f32.mrb[55].mxu1 }
 0x254   :  { %v4130_v33 = vpop.f32.mrb[75].mxu0 }
 0x255   :  { %v1723_v8 = vadd.f32 %v1705_v25, %v1535_v53  ;;  %v2102_v25 = vld [vmem:[%s6121_s7 + $0x1] ss:$0 sm:$0xff]  ;;  %v2425_v53 = vld [vmem:[%s6120_s6 + $0x228] sm:$0xff] }
 0x256   :  { %v1522_v30 = vpop.f32.mrb[56].mxu1  ;;  %v2117_v33 = vld [vmem:[%s6119_s5] sm:$0xff] }
 0x257   :  { %v2086_v39 = vpop.f32.mrb[76].mxu0  ;;  %v1536_v5 = vadd.f32 %v1522_v30, %v1348_v32  ;;  %v4046_v19 = vpop.f32.mrb[57].mxu1  ;;  %v2424_v30 = vld [vmem:[%s6120_s6 + $0x220] sm:$0xff] }
 0x258   :  { %v4133_v20 = vpop.f32.mrb[77].mxu0  ;;  %v2267_v19 = vld [vmem:[%s6119_s5 + $0x10] sm:$0xff] }
 0x259   :  { %v1724_v47 = vadd.f32 %v1710_v2, %v1536_v5  ;;  %v2433_v5 = vld [vmem:[%s6120_s6 + $0x268] sm:$0xff] }
 0x25a   :  { %v1527_v13 = vpop.f32.mrb[58].mxu1 }
 0x25b   :  { %v2091_v56 = vpop.f32.mrb[78].mxu0  ;;  %v1537_v0 = vadd.f32 %v1527_v13, %v1349_v58  ;;  %v4049_v51 = vpop.f32.mrb[59].mxu1 }
 0x25c   :  { %v4136_v28 = vpop.f32.mrb[79].mxu0  ;;  %v2437_v51 = vld [vmem:[%s6120_s6 + $0x288] sm:$0xff] }
 0x25d   :  { %v1725_v23 = vadd.f32 %v1715_v59, %v1537_v0  ;;  %v2432_v0 = vld [vmem:[%s6120_s6 + $0x260] sm:$0xff]  ;;  %v2441_v28 = vld [vmem:[%s6120_s6 + $0x2a8] sm:$0xff] }
 0x25e   :  { %v1873_v60 = vpop.f32.mrb[60].mxu1 }
 0x25f   :  { %v1907_v41 = vadd.f32 %v1873_v60, %v1719_v16  ;;  %v4089_v24 = vpop.f32.mrb[61].mxu1  ;;  %v4365_v60 = vpack.c.bf16 %v2441_v28, %v2437_v51  ;;  %v2469_v28 = vld [vmem:[%s6120_s6 + $0x388] sm:$0xff] }
 0x260   :  { %v2440_v24 = vld [vmem:[%s6120_s6 + $0x2a0] sm:$0xff] }
 0x261   :  { %v2095_v37 = vadd.f32 %v2061_v62, %v1907_v41  ;;  %v2436_v41 = vld [vmem:[%s6120_s6 + $0x280] sm:$0xff] }
 0x262   :  { %v1878_v18 = vpop.f32.mrb[62].mxu1 }
 0x263   :  { %v1908_v54 = vadd.f32 %v1878_v18, %v1720_v15  ;;  %v4092_v26 = vpop.f32.mrb[63].mxu1  ;;  %v2103_v27 = vadd.f32 %v2102_v25, %v2095_v37  ;;  %v2445_v37 = vld [vmem:[%s6120_s6 + $0x2c8] sm:$0xff]  ;;  %v4367_v18 = vpack.c.bf16 %v2440_v24, %v2436_v41  ;;  %v2475_v24 = vld [vmem:[%s6120_s6 + $0x3b8] sm:$0xff] }
 0x264   :  { %v2444_v26 = vld [vmem:[%s6120_s6 + $0x2c0] sm:$0xff] }
 0x265   :  { %v2096_v29 = vadd.f32 %v2066_v7, %v1908_v54  ;;  %v2110_v48 = vmax.f32 %v2103_v27, 0.0  ;;  %v2448_v27 = vld [vmem:[%s6120_s6 + $0x2e0] sm:$0xff] }
 0x266   :  { %v1883_v2 = vpop.f32.mrb[64].mxu1 }
 0x267   :  { %v2104_v46 = vadd.f32 %v2102_v25, %v2096_v29  ;;  %v1909_v57 = vadd.f32 %v1883_v2, %v1721_v6  ;;  %v4095_v32 = vpop.f32.mrb[65].mxu1  ;;  %v2453_v29 = vld [vmem:[%s6120_s6 + $0x308] sm:$0xff] }
 0x268   :  { %v2457_v2 = vld [vmem:[%s6120_s6 + $0x328] sm:$0xff] }
 0x269   :  { %v2111_v63 = vmax.f32 %v2104_v46, 0.0  ;;  %v2097_v59 = vadd.f32 %v2071_v45, %v1909_v57  ;;  %v2192_v46 = vld [vmem:[%s6119_s5 + $0x8] sm:$0xff]  ;;  %v4371_v57 = vpack.c.bf16 %v2448_v27, %v2444_v26  ;;  %v4373_v32 = vpack.c.bf16 %v2457_v2, %v2453_v29  ;;  %v2474_v27 = vld [vmem:[%s6120_s6 + $0x3b0] sm:$0xff] }
 0x26a   :  { %v1888_v52 = vpop.f32.mrb[66].mxu1  ;;  %v2477_v29 = vld [vmem:[%s6120_s6 + $0x3c8] sm:$0xff] }
 0x26b   :  { %v5526_v36 = vpack.c.bf16 %v2111_v63, %v2110_v48  ;;  %v1910_v58 = vadd.f32 %v1888_v52, %v1722_v21  ;;  %v4098_v38 = vpop.f32.mrb[67].mxu1  ;;  %v2105_v62 = vadd.f32 %v2102_v25, %v2097_v59  ;;  %v2423_v48 = vld [vmem:[%s6120_s6 + $0x218] sm:$0xff]  ;;  %v2422_v59 = vld [vmem:[%s6120_s6 + $0x210] sm:$0xff]  ;;  %v2481_v2 = vld [vmem:[%s6120_s6 + $0x3e8] sm:$0xff] }
 0x26c   :  { %v2427_v63 = vld [vmem:[%s6120_s6 + $0x238] sm:$0xff]  ;;  %v2426_v52 = vld [vmem:[%s6120_s6 + $0x230] sm:$0xff] }
 0x26d   :  { %v2098_v42 = vadd.f32 %v2076_v55, %v1910_v58  ;;  %4323 = vmatpush3.bf16.msra.mxu1 %v5526_v36  ;;  %4341 = vmatpush3.bf16.msra.mxu0 %v5526_v36  ;;  %v2112_v7 = vmax.f32 %v2105_v62, 0.0  ;;  %v2435_v58 = vld [vmem:[%s6120_s6 + $0x278] sm:$0xff]  ;;  %v4389_v38 = vpack.c.bf16 %v2427_v63, %v2423_v48  ;;  %v2476_v63 = vld [vmem:[%s6120_s6 + $0x3c0] sm:$0xff] }
 0x26e   :  { %v1893_v43 = vpop.f32.mrb[68].mxu1  ;;  %4324 = vmatprep.subr.bf16.mxu1 %v4594_v40  ;;  %4342 = vmatprep.subr.bf16.mxu0 %v4594_v40  ;;  %v2342_v62 = vld [vmem:[%s6119_s5 + $0x18] sm:$0xff] }
 0x26f   :  { %v2106_v14 = vadd.f32 %v2102_v25, %v2098_v42  ;;  %v1911_v16 = vadd.f32 %v1893_v43, %v1723_v8  ;;  %v4101_v44 = vpop.f32.mrb[69].mxu1  ;;  %v2420_v8 = vld [vmem:[%s6120_s6 + $0x200] sm:$0xff]  ;;  %v4391_v42 = vpack.c.bf16 %v2426_v52, %v2422_v59  ;;  %v2483_v48 = vld [vmem:[%s6120_s6 + $0x3f8] sm:$0xff] }
 0x270   :  { %v2439_v44 = vld [vmem:[%s6120_s6 + $0x298] sm:$0xff]  ;;  %v2480_v52 = vld [vmem:[%s6120_s6 + $0x3e0] sm:$0xff] }
 0x271   :  { %v2113_v9 = vmax.f32 %v2106_v14, 0.0  ;;  %v2099_v49 = vadd.f32 %v2081_v35, %v1911_v16  ;;  %v2421_v35 = vld [vmem:[%s6120_s6 + $0x208] sm:$0xff]  ;;  %v2430_v14 = vld [vmem:[%s6120_s6 + $0x250] sm:$0xff] }
 0x272   :  { %v1898_v61 = vpop.f32.mrb[70].mxu1  ;;  %v4357_v20 = vpack.c.bf16 %v2425_v53, %v2421_v35  ;;  %v2434_v16 = vld [vmem:[%s6120_s6 + $0x270] sm:$0xff] }
 0x273   :  { %v5532_v15 = vpack.c.bf16 %v2113_v9, %v2112_v7  ;;  %v1912_v31 = vadd.f32 %v1898_v61, %v1724_v47  ;;  %v4104_v45 = vpop.f32.mrb[71].mxu1  ;;  %v2107_v22 = vadd.f32 %v2102_v25, %v2099_v49  ;;  %v4359_v47 = vpack.c.bf16 %v2424_v30, %v2420_v8  ;;  %v2443_v7 = vld [vmem:[%s6120_s6 + $0x2b8] sm:$0xff]  ;;  %v2438_v61 = vld [vmem:[%s6120_s6 + $0x290] sm:$0xff] }
 0x274   :  { %v4395_v9 = vpack.c.bf16 %v2434_v16, %v2430_v14  ;;  %v4397_v49 = vpack.c.bf16 %v2443_v7, %v2439_v44  ;;  %v2451_v45 = vld [vmem:[%s6120_s6 + $0x2f8] sm:$0xff]  ;;  %v2458_v53 = vld [vmem:[%s6120_s6 + $0x330] sm:$0xff]  ;;  %v2419_v14 = vld [vmem:[%s6115_s1] sm:$0x3] }
 0x275   :  { %v2100_v1 = vadd.f32 %v2086_v39, %v1912_v31  ;;  %4326 = vmatpush3.bf16.msra.mxu1 %v5532_v15  ;;  %4344 = vmatpush3.bf16.msra.mxu0 %v5532_v15  ;;  %v2114_v12 = vmax.f32 %v2107_v22, 0.0  ;;  %v2429_v39 = vld [vmem:[%s6120_s6 + $0x248] sm:$0xff]  ;;  %v2447_v31 = vld [vmem:[%s6120_s6 + $0x2d8] sm:$0xff] }
 0x276   :  { %v1903_v4 = vpop.f32.mrb[72].mxu1  ;;  %4327 = vmatprep.subr.bf16.mxu1 %v4594_v40  ;;  %4345 = vmatprep.subr.bf16.mxu0 %v4594_v40  ;;  %v4361_v13 = vpack.c.bf16 %v2433_v5, %v2429_v39  ;;  %v2463_v39 = vld [vmem:[%s6120_s6 + $0x358] sm:$0xff] }
 0x277   :  { %v2108_v6 = vadd.f32 %v2102_v25, %v2100_v1  ;;  %v1913_v10 = vadd.f32 %v1903_v4, %v1725_v23  ;;  %v4107_v55 = vpop.f32.mrb[73].mxu1  ;;  %v4401_v1 = vpack.c.bf16 %v2451_v45, %v2447_v31  ;;  %v2446_v4 = vld [vmem:[%s6120_s6 + $0x2d0] sm:$0xff]  ;;  %v2467_v5 = vld [vmem:[%s6120_s6 + $0x378] sm:$0xff] }
 0x278   :  { %v2459_v55 = vld [vmem:[%s6120_s6 + $0x338] sm:$0xff]  ;;  %v2657_v31 = vld [vmem:[%s6120_s6 + $0x30] sm:$0xff] }
 0x279   :  { %v2115_v17 = vmax.f32 %v2108_v6, 0.0  ;;  %v2101_v3 = vadd.f32 %v2091_v56, %v1913_v10  ;;  %v2428_v56 = vld [vmem:[%s6120_s6 + $0x240] sm:$0xff]  ;;  %v2450_v6 = vld [vmem:[%s6120_s6 + $0x2f0] sm:$0xff]  ;;  %v2455_v10 = vld [vmem:[%s6120_s6 + $0x318] sm:$0xff] }
 0x27a   :  { %v4363_v23 = vpack.c.bf16 %v2432_v0, %v2428_v56  ;;  %v2466_v56 = vld [vmem:[%s6120_s6 + $0x370] sm:$0xff]  ;;  %v2654_v44 = vld [vmem:[%s6120_s6 + $0x18] sm:$0xff] }
 0x27b   :  { %v5538_v21 = vpack.c.bf16 %v2115_v17, %v2114_v12  ;;  %v2109_v50 = vadd.f32 %v2102_v25, %v2101_v3  ;;  %v2449_v25 = vld [vmem:[%s6120_s6 + $0x2e8] sm:$0xff]  ;;  %v4403_v12 = vpack.c.bf16 %v2450_v6, %v2446_v4  ;;  %v4405_v17 = vpack.c.bf16 %v2459_v55, %v2455_v10  ;;  %v2452_v3 = vld [vmem:[%s6120_s6 + $0x300] sm:$0xff]  ;;  %v2658_v7 = vld [vmem:[%s6120_s6 + $0x38] sm:$0xff] }
 0x27c   :  { %v4369_v54 = vpack.c.bf16 %v2449_v25, %v2445_v37  ;;  %v2468_v25 = vld [vmem:[%s6120_s6 + $0x380] sm:$0xff]  ;;  %v2662_v4 = vld [vmem:[%s6120_s6 + $0x58] sm:$0xff] }
 0x27d   :  { %4329 = vmatpush3.bf16.msra.mxu1 %v5538_v21  ;;  %4347 = vmatpush3.bf16.msra.mxu0 %v5538_v21  ;;  %v5550_v11 = vmax.f32 %v2109_v50, 0.0  ;;  %v2454_v50 = vld [vmem:[%s6120_s6 + $0x310] sm:$0xff]  ;;  %v2666_v55 = vld [vmem:[%s6120_s6 + $0x78] sm:$0xff] }
 0x27e   :  { %4149 = vmatprep.subr.mxu1 %v4593_v34  ;;  %4183 = vmatprep.subr.mxu0 %v4593_v34  ;;  %v4407_v8 = vpack.c.bf16 %v2458_v53, %v2454_v50 }
 0x281   :  { %4150 = vmatpush3.msra.mxu1 %v5550_v11  ;;  %4184 = vmatpush3.msra.mxu0 %v5550_v11 }
 0x282   :  { %4330 = vmatprep.subr.bf16.mxu1 %v4594_v40  ;;  %4152 = vmatmul.mubr.msk.f32.vlgmr.msra.gmra.mrb[74].mxu1 %vm2118_vm2, %v2117_v33  ;;  %v2465_v33 = vld [vmem:[%s6120_s6 + $0x368] sm:$0xff] }
 0x283   :  { %4332 = vmatpush3.bf16.msra.mxu1 %v5526_v36  ;;  %4168 = vmatprep.mubr.msk.f32.mxu1 %vm4595_vm1, %v4593_v34 }
 0x284   :  { %4333 = vmatprep.subr.bf16.mxu1 %v4594_v40  ;;  %4186 = vmatmul.mubr.msk.f32.vlgmr.msra.gmra.mrb[80].mxu0 %vm2118_vm2, %v2267_v19  ;;  %v2460_v19 = vld [vmem:[%s6120_s6 + $0x340] sm:$0xff] }
 0x285   :  { %4358 = vmatprep.subr.bf16.mxu0 %v4357_v20  ;;  %2548 = vmatprep.mubr.f32.mxu0 %v4593_v34  ;;  %v4409_v20 = vpack.c.bf16 %v2467_v5, %v2463_v39  ;;  %v2823_v39 = vld [vmem:[%s6120_s6 + $0xb8] sm:$0xff] }
 0x286   :  { %4360 = vmatpush1.bf16.msra.mxu0 %v4359_v47  ;;  %v2464_v47 = vld [vmem:[%s6120_s6 + $0x360] sm:$0xff] }
 0x287   :  { %4335 = vmatpush3.bf16.msra.mxu1 %v5532_v15  ;;  %4362 = vmatprep.subr.bf16.mxu0 %v4361_v13  ;;  %v2462_v13 = vld [vmem:[%s6120_s6 + $0x350] sm:$0xff]  ;;  %v4379_v0 = vpack.c.bf16 %v2464_v47, %v2460_v19 }
 0x288   :  { %4336 = vmatprep.subr.bf16.mxu1 %v4594_v40  ;;  %v4411_v51 = vpack.c.bf16 %v2466_v56, %v2462_v13 }
 0x28a   :  { %4364 = vmatpush1.bf16.msra.mxu0 %v4363_v23  ;;  %v2473_v23 = vld [vmem:[%s6120_s6 + $0x3a8] sm:$0xff] }
 0x28b   :  { %4338 = vmatpush3.bf16.msra.mxu1 %v5538_v21  ;;  %4366 = vmatprep.subr.bf16.mxu0 %v4365_v60  ;;  %v2471_v60 = vld [vmem:[%s6120_s6 + $0x398] sm:$0xff]  ;;  %v4381_v41 = vpack.c.bf16 %v2473_v23, %v2469_v28  ;;  %v2816_v23 = vld [vmem:[%s6120_s6 + $0x80] sm:$0xff] }
 0x28c   :  { %4166 = vmatprep.subr.mxu1 %v4593_v34  ;;  %v4413_v37 = vpack.c.bf16 %v2475_v24, %v2471_v60  ;;  %v2820_v60 = vld [vmem:[%s6120_s6 + $0xa0] sm:$0xff]  ;;  %v2822_v24 = vld [vmem:[%s6120_s6 + $0xb0] sm:$0xff] }
 0x28e   :  { %4368 = vmatpush1.bf16.msra.mxu0 %v4367_v18  ;;  %v2472_v18 = vld [vmem:[%s6120_s6 + $0x3a0] sm:$0xff] }
 0x28f   :  { %4167 = vmatpush3.msra.mxu1 %v5550_v11  ;;  %4370 = vmatprep.subr.bf16.mxu0 %v4369_v54  ;;  %v2470_v54 = vld [vmem:[%s6120_s6 + $0x390] sm:$0xff]  ;;  %v4383_v26 = vpack.c.bf16 %v2472_v18, %v2468_v25  ;;  %v2829_v25 = vld [vmem:[%s6120_s6 + $0xe8] sm:$0xff]  ;;  %v2827_v18 = vld [vmem:[%s6120_s6 + $0xd8] sm:$0xff] }
 0x290   :  { %4169 = vmatmul.mubr.msk.f32.vlgmr.msra.gmra.mrb[76].mxu1 %vm2118_vm2, %v2192_v46  ;;  %4348 = vmatprep.subr.bf16.mxu1 %v4594_v40  ;;  %v4415_v46 = vpack.c.bf16 %v2474_v27, %v2470_v54  ;;  %v2831_v54 = vld [vmem:[%s6120_s6 + $0xf8] sm:$0xff]  ;;  %v4439_v27 = vpack.c.bf16 %v2820_v60, %v2816_v23  ;;  %v3154_v23 = vld [vmem:[%s6120_s6 + $0x1c0] sm:$0xff] }
 0x291   :  { %4350 = vmatpush3.bf16.msra.mxu1 %v5526_v36  ;;  %4202 = vmatprep.mubr.msk.f32.mxu1 %vm4595_vm1, %v4593_v34  ;;  %v2431_v36 = vld [vmem:[%s6120_s6 + $0x258] sm:$0xff] }
 0x292   :  { %4351 = vmatprep.subr.bf16.mxu1 %v4594_v40  ;;  %4372 = vmatpush1.bf16.msra.mxu0 %v4371_v57  ;;  %v4393_v43 = vpack.c.bf16 %v2435_v58, %v2431_v36  ;;  %v4385_v57 = vpack.c.bf16 %v2481_v2, %v2477_v29  ;;  %v2478_v36 = vld [vmem:[%s6120_s6 + $0x3d0] sm:$0xff]  ;;  %v2824_v2 = vld [vmem:[%s6120_s6 + $0xc0] sm:$0xff] }
 0x293   :  { %4374 = vmatprep.subr.bf16.mxu0 %v4373_v32  ;;  %v2479_v32 = vld [vmem:[%s6120_s6 + $0x3d8] sm:$0xff]  ;;  %v2482_v58 = vld [vmem:[%s6120_s6 + $0x3f0] sm:$0xff] }
 0x294   :  { %v4417_v59 = vpack.c.bf16 %v2483_v48, %v2479_v32  ;;  %v4449_v48 = vpack.c.bf16 %v2831_v54, %v2827_v18  ;;  %v3160_v18 = vld [vmem:[%s6120_s6 + $0x1f0] sm:$0xff] }
 0x295   :  { %4353 = vmatpush3.bf16.msra.mxu1 %v5532_v15  ;;  %v2442_v15 = vld [vmem:[%s6120_s6 + $0x2b0] sm:$0xff] }
 0x296   :  { %4354 = vmatprep.subr.bf16.mxu1 %v4594_v40  ;;  %v4399_v22 = vpack.c.bf16 %v2442_v15, %v2438_v61  ;;  %v2655_v61 = vld [vmem:[%s6120_s6 + $0x20] sm:$0xff]  ;;  %v2653_v15 = vld [vmem:[%s6120_s6 + $0x10] sm:$0xff] }
 0x297   :  { %v4431_v6 = vpack.c.bf16 %v2657_v31, %v2653_v15  ;;  %v2994_v15 = vld [vmem:[%s6120_s6 + $0x168] sm:$0xff]  ;;  %v2992_v31 = vld [vmem:[%s6120_s6 + $0x158] sm:$0xff] }
 0x299   :  { %4356 = vmatpush3.bf16.msra.mxu1 %v5538_v21  ;;  %v2456_v21 = vld [vmem:[%s6120_s6 + $0x320] sm:$0xff] }
 0x29a   :  { %4200 = vmatprep.subr.mxu1 %v4593_v34  ;;  %v4375_v35 = vpack.c.bf16 %v2456_v21, %v2452_v3  ;;  %v2663_v3 = vld [vmem:[%s6120_s6 + $0x60] sm:$0xff]  ;;  %v2661_v21 = vld [vmem:[%s6120_s6 + $0x50] sm:$0xff] }
 0x29c   :  { %4376 = vmatpush1.bf16.msra.mxu0 %v4375_v35  ;;  %v2665_v35 = vld [vmem:[%s6120_s6 + $0x70] sm:$0xff] }
 0x29d   :  { %4201 = vmatpush3.msra.mxu1 %v5550_v11  ;;  %v2461_v11 = vld [vmem:[%s6120_s6 + $0x348] sm:$0xff]  ;;  %v4435_v53 = vpack.c.bf16 %v2665_v35, %v2661_v21  ;;  %v3149_v35 = vld [vmem:[%s6120_s6 + $0x198] sm:$0xff] }
 0x29e   :  { %4203 = vmatmul.mubr.msk.f32.vlgmr.msra.gmra.mrb[78].mxu1 %vm2118_vm2, %v2342_v62  ;;  %4390 = vmatprep.subr.bf16.mxu1 %v4389_v38  ;;  %v4377_v30 = vpack.c.bf16 %v2465_v33, %v2461_v11  ;;  %v4387_v38 = vpack.c.bf16 %v2480_v52, %v2476_v63  ;;  %v4419_v62 = vpack.c.bf16 %v2482_v58, %v2478_v36  ;;  %v2817_v11 = vld [vmem:[%s6120_s6 + $0x88] sm:$0xff]  ;;  %v2830_v52 = vld [vmem:[%s6120_s6 + $0xf0] sm:$0xff] }
 0x29f   :  { %4392 = vmatpush1.bf16.msra.mxu1 %v4391_v42  ;;  %2619 = vmatprep.mubr.f32.mxu1 %v4593_v34  ;;  %v2652_v42 = vld [vmem:[%s6120_s6 + $0x8] sm:$0xff] }
 0x2a0   :  { %4394 = vmatprep.subr.bf16.mxu1 %v4393_v43  ;;  %4378 = vmatprep.subr.bf16.mxu0 %v4377_v30  ;;  %v2656_v43 = vld [vmem:[%s6120_s6 + $0x28] sm:$0xff] }
 0x2a1   :  { %4380 = vmatpush1.bf16.msra.mxu0 %v4379_v0  ;;  %v4421_v16 = vpack.c.bf16 %v2656_v43, %v2652_v42  ;;  %v2821_v33 = vld [vmem:[%s6120_s6 + $0xa8] sm:$0xff] }
 0x2a2   :  { %4382 = vmatprep.subr.bf16.mxu0 %v4381_v41  ;;  %v4437_v30 = vpack.c.bf16 %v2821_v33, %v2817_v11  ;;  %v2818_v41 = vld [vmem:[%s6120_s6 + $0x90] sm:$0xff]  ;;  %v2982_v36 = vld [vmem:[%s6120_s6 + $0x108] sm:$0xff] }
 0x2a3   :  { %4396 = vmatpush1.bf16.msra.mxu1 %v4395_v9  ;;  %v2651_v9 = vld [vmem:[%s6120_s6] sm:$0xff]  ;;  %v4447_v29 = vpack.c.bf16 %v2822_v24, %v2818_v41  ;;  %v2986_v58 = vld [vmem:[%s6120_s6 + $0x128] sm:$0xff] }
 0x2a4   :  { %4398 = vmatprep.subr.bf16.mxu1 %v4397_v49  ;;  %v4429_v49 = vpack.c.bf16 %v2658_v7, %v2654_v44  ;;  %v4423_v45 = vpack.c.bf16 %v2655_v61, %v2651_v9  ;;  %v4453_v44 = vpack.c.bf16 %v2986_v58, %v2982_v36  ;;  %v2983_v9 = vld [vmem:[%s6120_s6 + $0x110] sm:$0xff]  ;;  %v2990_v61 = vld [vmem:[%s6120_s6 + $0x148] sm:$0xff]  ;;  %v3343_v36 = vld [vmem:[%s6122_s8 + $0x38] sm:$0xff] }
 0x2a5   :  { %4384 = vmatpush1.bf16.msra.mxu0 %v4383_v26  ;;  %v3147_v21 = vld [vmem:[%s6120_s6 + $0x188] sm:$0xff] }
 0x2a6   :  { %4386 = vmatprep.subr.bf16.mxu0 %v4385_v57 }
 0x2a7   :  { %4400 = vmatpush1.bf16.msra.mxu1 %v4399_v22  ;;  %v2660_v22 = vld [vmem:[%s6120_s6 + $0x48] sm:$0xff] }
 0x2a8   :  { %4402 = vmatprep.subr.bf16.mxu1 %v4401_v1  ;;  %v2664_v1 = vld [vmem:[%s6120_s6 + $0x68] sm:$0xff] }
 0x2a9   :  { %4388 = vmatpush1.bf16.msra.mxu0 %v4387_v38  ;;  %v4425_v10 = vpack.c.bf16 %v2664_v1, %v2660_v22  ;;  %v2984_v38 = vld [vmem:[%s6120_s6 + $0x118] sm:$0xff] }
 0x2aa   :  { %4422 = vmatprep.subr.bf16.mxu0 %v4421_v16  ;;  %v2985_v16 = vld [vmem:[%s6120_s6 + $0x120] sm:$0xff] }
 0x2ab   :  { %4404 = vmatpush1.bf16.msra.mxu1 %v4403_v12  ;;  %v4433_v12 = vpack.c.bf16 %v2666_v55, %v2662_v4  ;;  %v2989_v4 = vld [vmem:[%s6120_s6 + $0x140] sm:$0xff]  ;;  %v4457_v55 = vpack.c.bf16 %v2994_v15, %v2990_v61 }
 0x2ac   :  { %4406 = vmatprep.subr.bf16.mxu1 %v4405_v17  ;;  %2549 = vmatmul.mubr.f32.vlgmr.msra.gmra.mrb[82].mxu0 %v2419_v14  ;;  %v2659_v17 = vld [vmem:[%s6120_s6 + $0x40] sm:$0xff] }
 0x2ad   :  { %4424 = vmatpush1.bf16.msra.mxu0 %v4423_v45  ;;  %v4427_v50 = vpack.c.bf16 %v2663_v3, %v2659_v17  ;;  %2734 = vmatprep.mubr.f32.mxu0 %v4593_v34  ;;  %v2996_v45 = vld [vmem:[%s6120_s6 + $0x178] sm:$0xff]  ;;  %v2991_v17 = vld [vmem:[%s6120_s6 + $0x150] sm:$0xff]  ;;  %v3348_v15 = vld [vmem:[%s6122_s8 + $0x60] sm:$0xff] }
 0x2ae   :  { %4426 = vmatprep.subr.bf16.mxu0 %v4425_v10  ;;  %v2995_v3 = vld [vmem:[%s6120_s6 + $0x170] sm:$0xff] }
 0x2af   :  { %4408 = vmatpush1.bf16.msra.mxu1 %v4407_v8  ;;  %v2819_v8 = vld [vmem:[%s6120_s6 + $0x98] sm:$0xff]  ;;  %v4467_v33 = vpack.c.bf16 %v2995_v3, %v2991_v17  ;;  %v2627_v17 = vlaneseq }
 0x2b0   :  { %4410 = vmatprep.subr.bf16.mxu1 %v4409_v20  ;;  %v4445_v5 = vpack.c.bf16 %v2823_v39, %v2819_v8  ;;  %v3146_v8 = vld [vmem:[%s6120_s6 + $0x180] sm:$0xff] }
 0x2b1   :  { %4428 = vmatpush1.bf16.msra.mxu0 %v4427_v50  ;;  %v3151_v50 = vld [vmem:[%s6120_s6 + $0x1a8] sm:$0xff]  ;;  %v2628_v3 = vshrl.u32 %v2627_v17, 7 }
 0x2b2   :  { %4438 = vmatprep.subr.bf16.mxu0 %v4437_v30  ;;  %v3150_v30 = vld [vmem:[%s6120_s6 + $0x1a0] sm:$0xff]  ;;  %v4469_v39 = vpack.c.bf16 %v3151_v50, %v3147_v21 }
 0x2b3   :  { %4412 = vmatpush1.bf16.msra.mxu1 %v4411_v51  ;;  %v2629_v21 = vsub.s32 0, %v2628_v3  ;;  %v3627_v50 = vld [vmem:[%s6121_s7 + $0x2] ss:$8 sm:$0xf] }
 0x2b4   :  { %4414 = vmatprep.subr.bf16.mxu1 %v4413_v37  ;;  %v2825_v37 = vld [vmem:[%s6120_s6 + $0xc8] sm:$0xff] }
 0x2b5   :  { %v4441_v32 = vpack.c.bf16 %v2829_v25, %v2825_v37  ;;  %v3158_v37 = vld [vmem:[%s6120_s6 + $0x1e0] sm:$0xff]  ;;  %v3156_v25 = vld [vmem:[%s6120_s6 + $0x1d0] sm:$0xff] }
 0x2b6   :  { %v4475_v54 = vpack.c.bf16 %v3158_v37, %v3154_v23 }
 0x2b7   :  { %4416 = vmatpush1.bf16.msra.mxu1 %v4415_v46  ;;  %v2828_v46 = vld [vmem:[%s6120_s6 + $0xe0] sm:$0xff] }
 0x2b8   :  { %4418 = vmatprep.subr.bf16.mxu1 %v4417_v59  ;;  %v2826_v59 = vld [vmem:[%s6120_s6 + $0xd0] sm:$0xff]  ;;  %v4443_v42 = vpack.c.bf16 %v2828_v46, %v2824_v2  ;;  %v3337_v2 = vld [vmem:[%s6122_s8 + $0x8] sm:$0xff] }
 0x2b9   :  { %v4451_v43 = vpack.c.bf16 %v2830_v52, %v2826_v59  ;;  %v3342_v52 = vld [vmem:[%s6122_s8 + $0x30] sm:$0xff] }
 0x2ba   :  { %v4495_v58 = vpack.c.bf16 %v3343_v36, %v3342_v52  ;;  %v3430_v36 = vld [vmem:[%s6122_s8 + $0xb0] sm:$0xff] }
 0x2bb   :  { %4420 = vmatpush1.bf16.msra.mxu1 %v4419_v62  ;;  %v2988_v62 = vld [vmem:[%s6120_s6 + $0x138] sm:$0xff] }
 0x2bc   :  { %4430 = vmatprep.subr.bf16.mxu1 %v4429_v49  ;;  %v4461_v7 = vpack.c.bf16 %v2988_v62, %v2984_v38  ;;  %v2987_v49 = vld [vmem:[%s6120_s6 + $0x130] sm:$0xff]  ;;  %v3344_v38 = vld [vmem:[%s6122_s8 + $0x40] sm:$0xff]  ;;  %v3345_v62 = vld [vmem:[%s6122_s8 + $0x48] sm:$0xff] }
 0x2bd   :  { %v4463_v1 = vpack.c.bf16 %v2987_v49, %v2983_v9  ;;  %v3427_v49 = vld [vmem:[%s6122_s8 + $0x98] sm:$0xff] }
 0x2be   :  { %2620 = vmatmul.mubr.f32.vlgmr.msra.gmra.mrb[80].mxu1 %v2419_v14  ;;  %v2981_v14 = vld [vmem:[%s6120_s6 + $0x100] sm:$0xff] }
 0x2bf   :  { %4432 = vmatpush1.bf16.msra.mxu1 %v4431_v6  ;;  %2805 = vmatprep.mubr.f32.mxu1 %v4593_v34  ;;  %v4455_v22 = vpack.c.bf16 %v2985_v16, %v2981_v14  ;;  %v2993_v6 = vld [vmem:[%s6120_s6 + $0x160] sm:$0xff]  ;;  %v3347_v14 = vld [vmem:[%s6122_s8 + $0x58] sm:$0xff] }
 0x2c0   :  { %4434 = vmatprep.subr.bf16.mxu1 %v4433_v12  ;;  %v4465_v12 = vpack.c.bf16 %v2996_v45, %v2992_v31  ;;  %v4459_v11 = vpack.c.bf16 %v2993_v6, %v2989_v4  ;;  %v3424_v16 = vld [vmem:[%s6122_s8 + $0x80] sm:$0xff]  ;;  %v3349_v31 = vld [vmem:[%s6122_s8 + $0x68] sm:$0xff]  ;;  %v3350_v6 = vld [vmem:[%s6122_s8 + $0x70] sm:$0xff] }
 0x2c1   :  { %v4504_v4 = vpack.c.bf16 %v3349_v31, %v3348_v15 }
 0x2c3   :  { %4436 = vmatpush1.bf16.msra.mxu1 %v4435_v53  ;;  %v3153_v53 = vld [vmem:[%s6120_s6 + $0x1b8] sm:$0xff] }
 0x2c4   :  { %4446 = vmatprep.subr.bf16.mxu1 %v4445_v5  ;;  %v4477_v5 = vpack.c.bf16 %v3153_v53, %v3149_v35  ;;  %v2633_v35 = vsub.s32 1, %v2628_v3  ;;  %v2630_v53 = vrot.slane %v3627_v50, %v2629_v21 }
 0x355   :  { %v2188_v19 = vpop.f32.mrb[74].mxu1 }
 0x356   :  { %v4153_v20 = vpop.f32.mrb[75].mxu1 }
 0x357   :  { %v2337_v47 = vpop.f32.mrb[80].mxu0  ;;  %v3152_v20 = vld [vmem:[%s6120_s6 + $0x1b0] sm:$0xff] }
 0x358   :  { %v4187_v13 = vpop.f32.mrb[81].mxu0 }
 0x359   :  { %v3159_v13 = vld [vmem:[%s6120_s6 + $0x1e8] sm:$0xff] }
 0x363   :  { %v2262_v56 = vpop.f32.mrb[76].mxu1 }
 0x364   :  { %v2266_v0 = vmax.f32 %v2188_v19, %v2262_v56  ;;  %v4170_v51 = vpop.f32.mrb[77].mxu1  ;;  %v3148_v19 = vld [vmem:[%s6120_s6 + $0x190] sm:$0xff]  ;;  %v3157_v56 = vld [vmem:[%s6120_s6 + $0x1d8] sm:$0xff] }
 0x365   :  { %v4471_v51 = vpack.c.bf16 %v3150_v30, %v3146_v8 }
 0x366   :  { %v2341_v28 = vmax.f32 %v2266_v0, %v2337_v47  ;;  %v3155_v47 = vld [vmem:[%s6120_s6 + $0x1c8] sm:$0xff]  ;;  %v3161_v0 = vld [vmem:[%s6120_s6 + $0x1f8] sm:$0xff] }
 0x367   :  { %v4473_v41 = vpack.c.bf16 %v3159_v13, %v3155_v47  ;;  %v4481_v24 = vpack.c.bf16 %v3161_v0, %v3157_v56 }
 0x371   :  { %v2412_v26 = vpop.f32.mrb[78].mxu1 }
 0x372   :  { %v5873_v57 = vmax.f32 %v2341_v28, %v2412_v26  ;;  %v4204_v63 = vpop.f32.mrb[79].mxu1  ;;  %v4479_v28 = vpack.c.bf16 %v3152_v20, %v3148_v19  ;;  %v4483_v26 = vpack.c.bf16 %v3160_v18, %v3156_v25 }
 0x373   :  { %v3341_v63 = vld [vmem:[%s6122_s8 + $0x28] sm:$0xff] }
 0x374   :  { %3628 = vmatmul.mubr.msk.f32.vlgmr.msra.gmra.mrb[82].mxu0 %vm69_vm0, %v5873_v57  ;;  %3629 = vmatmul.mubr.msk.f32.vlgmr.msra.gmra.mrb[80].mxu1 %vm69_vm0, %v5873_v57  ;;  %v2832_v10 = vrot.slane %v5873_v57, 2  ;;  %v2997_v60 = vrot.slane %v5873_v57, 4 }
 0x375   :  { %4440 = vmatpush1.bf16.msra.mxu0 %v4439_v27  ;;  %4448 = vmatpush1.bf16.msra.mxu1 %v4447_v29  ;;  %v3162_v27 = vrot.slane %v5873_v57, 6  ;;  %v3336_v29 = vld [vmem:[%s6122_s8] sm:$0xff]  ;;  %v3338_v57 = vld [vmem:[%s6122_s8 + $0x10] sm:$0xff] }
 0x376   :  { %4442 = vmatprep.subr.bf16.mxu0 %v4441_v32  ;;  %4450 = vmatprep.subr.bf16.mxu1 %v4449_v48  ;;  %v4486_v46 = vpack.c.bf16 %v3337_v2, %v3336_v29  ;;  %v3340_v32 = vld [vmem:[%s6122_s8 + $0x20] sm:$0xff] }
 0x377   :  { %2899 = vmatprep.mubr.f32.mxu0 %v4593_v34  ;;  %2970 = vmatprep.mubr.f32.mxu1 %v4593_v34  ;;  %v4492_v59 = vpack.c.bf16 %v3341_v63, %v3340_v32  ;;  %v3330_v29 = vld [vmem:[%s6116_s2] sm:$0x3] }
 0x379   :  { %4444 = vmatpush1.bf16.msra.mxu0 %v4443_v42  ;;  %4452 = vmatpush1.bf16.msra.mxu1 %v4451_v43  ;;  %v4498_v42 = vpack.c.bf16 %v3345_v62, %v3344_v38  ;;  %v3346_v43 = vld [vmem:[%s6122_s8 + $0x50] sm:$0xff]  ;;  %v3352_v62 = vld [vmem:[%s6121_s7 + $0x3] ss:$0 sm:$0xff] }
 0x37a   :  { %4454 = vmatprep.subr.bf16.mxu0 %v4453_v44  ;;  %4462 = vmatprep.subr.bf16.mxu1 %v4461_v7  ;;  %v3425_v44 = vld [vmem:[%s6122_s8 + $0x88] sm:$0xff]  ;;  %v3426_v7 = vld [vmem:[%s6122_s8 + $0x90] sm:$0xff]  ;;  %v4501_v61 = vpack.c.bf16 %v3347_v14, %v3346_v43 }
 0x37b   :  { %v4510_v9 = vpack.c.bf16 %v3425_v44, %v3424_v16  ;;  %v4513_v45 = vpack.c.bf16 %v3427_v49, %v3426_v7  ;;  %v3432_v44 = vld [vmem:[%s6121_s7 + $0x4] ss:$0 sm:$0xff] }
 0x37c   :  { %3630 = vmatmul.mubr.msk.f32.vlgmr.msra.gmra.mrb[82].mxu0 %vm69_vm0, %v2832_v10  ;;  %3631 = vmatmul.mubr.msk.f32.vlgmr.msra.gmra.mrb[80].mxu1 %vm69_vm0, %v2832_v10  ;;  %v3351_v10 = vld [vmem:[%s6122_s8 + $0x78] sm:$0xff] }
 0x37d   :  { %4456 = vmatpush1.bf16.msra.mxu0 %v4455_v22  ;;  %4464 = vmatpush1.bf16.msra.mxu1 %v4463_v1  ;;  %v3428_v22 = vld [vmem:[%s6122_s8 + $0xa0] sm:$0xff]  ;;  %v3429_v1 = vld [vmem:[%s6122_s8 + $0xa8] sm:$0xff] }
 0x37e   :  { %4458 = vmatprep.subr.bf16.mxu0 %v4457_v55  ;;  %4466 = vmatprep.subr.bf16.mxu1 %v4465_v12  ;;  %v4516_v55 = vpack.c.bf16 %v3429_v1, %v3428_v22  ;;  %v4507_v12 = vpack.c.bf16 %v3351_v10, %v3350_v6 }
 0x37f   :  { %3064 = vmatprep.mubr.f32.mxu0 %v4593_v34  ;;  %3135 = vmatprep.mubr.f32.mxu1 %v4593_v34 }
 0x381   :  { %4460 = vmatpush1.bf16.msra.mxu0 %v4459_v11  ;;  %4468 = vmatpush1.bf16.msra.mxu1 %v4467_v33  ;;  %v2634_v11 = vrot.slane %v3627_v50, %v2633_v35  ;;  %v2641_v33 = vsub.s32 3, %v2628_v3 }
 0x382   :  { %4470 = vmatprep.subr.bf16.mxu0 %v4469_v39  ;;  %4478 = vmatprep.subr.bf16.mxu1 %v4477_v5 }
 0x383   :  { %v2642_v47 = vrot.slane %v3627_v50, %v2641_v33 }
 0x384   :  { %3632 = vmatmul.mubr.msk.f32.vlgmr.msra.gmra.mrb[82].mxu0 %vm69_vm0, %v2997_v60  ;;  %3633 = vmatmul.mubr.msk.f32.vlgmr.msra.gmra.mrb[80].mxu1 %vm69_vm0, %v2997_v60 }
 0x385   :  { %4472 = vmatpush1.bf16.msra.mxu0 %v4471_v51  ;;  %4480 = vmatpush1.bf16.msra.mxu1 %v4479_v28  ;;  %v2637_v28 = vsub.s32 2, %v2628_v3 }
 0x386   :  { %4474 = vmatprep.subr.bf16.mxu0 %v4473_v41  ;;  %4482 = vmatprep.subr.bf16.mxu1 %v4481_v24 }
 0x387   :  { %3229 = vmatprep.mubr.f32.mxu0 %v4593_v34  ;;  %3300 = vmatprep.mubr.f32.mxu1 %v4593_v34  ;;  %v2638_v60 = vrot.slane %v3627_v50, %v2637_v28 }
 0x389   :  { %4476 = vmatpush1.bf16.msra.mxu0 %v4475_v54  ;;  %4484 = vmatpush1.bf16.msra.mxu1 %v4483_v26 }
 0x38a   :  { %4485 = vmatprep.subr.bf16.mxu0 %v4594_v40  ;;  %4509 = vmatprep.subr.bf16.mxu1 %v4594_v40 }
 0x38c   :  { %3634 = vmatmul.mubr.msk.f32.vlgmr.msra.gmra.mrb[82].mxu0 %vm69_vm0, %v3162_v27  ;;  %3635 = vmatmul.mubr.msk.f32.vlgmr.msra.gmra.mrb[80].mxu1 %vm69_vm0, %v3162_v27 }
 0x38d   :  { %4237 = vmatprep.mubr.msk.f32.mxu0 %vm4595_vm1, %v4593_v34  ;;  %4256 = vmatprep.mubr.msk.f32.mxu1 %vm4595_vm1, %v4593_v34  ;;  %v3339_v34 = vld [vmem:[%s6122_s8 + $0x18] sm:$0xff] }
 0x38e   :  { %4487 = vmatpush3.bf16.msra.mxu0 %v4486_v46  ;;  %v4489_v48 = vpack.c.bf16 %v3339_v34, %v3338_v57  ;;  %4511 = vmatpush3.bf16.msra.mxu1 %v4510_v9 }
 0x38f   :  { %4488 = vmatprep.subr.bf16.mxu0 %v4594_v40  ;;  %4512 = vmatprep.subr.bf16.mxu1 %v4594_v40 }
 0x392   :  { %4490 = vmatpush3.bf16.msra.mxu0 %v4489_v48  ;;  %4514 = vmatpush3.bf16.msra.mxu1 %v4513_v45 }
 0x393   :  { %4491 = vmatprep.subr.bf16.mxu0 %v4594_v40  ;;  %4515 = vmatprep.subr.bf16.mxu1 %v4594_v40 }
 0x396   :  { %4493 = vmatpush3.bf16.msra.mxu0 %v4492_v59  ;;  %4517 = vmatpush3.bf16.msra.mxu1 %v4516_v55 }
 0x397   :  { %4494 = vmatprep.subr.bf16.mxu0 %v4594_v40  ;;  %4518 = vmatprep.subr.bf16.mxu1 %v4594_v40 }
 0x39a   :  { %4496 = vmatpush3.bf16.msra.mxu0 %v4495_v58  ;;  %v3431_v58 = vld [vmem:[%s6122_s8 + $0xb8] sm:$0xff]  ;;  %s4568_s8 = scalar_lea.vmem %s3517_s19, 32 }
 0x39b   :  { %4497 = vmatprep.subr.bf16.mxu0 %v4594_v40  ;;  %v4519_v38 = vpack.c.bf16 %v3431_v58, %v3430_v36  ;;  %p4569_p0 = scmp.ne.s32.totalorder %s3517_s19, %s4568_s8  ;;  %p4574_p2 = scmp.lt.s32.totalorder %s4568_s8, %s4568_s8 }
 0x39d   :  { %4520 = vmatpush3.bf16.msra.mxu1 %v4519_v38  ;;  %p4575_p3 = por %p4574_p2, %p4573_p1 }
 0x39e   :  { %4499 = vmatpush3.bf16.msra.mxu0 %v4498_v42 }
 0x39f   :  { %4500 = vmatprep.subr.bf16.mxu0 %v4594_v40  ;;  %p4576_p4 = pnand %p4575_p3, %p4569_p0 }
 0x3a2   :  { %4502 = vmatpush3.bf16.msra.mxu0 %v4501_v61 }
 0x3a3   :  { %4503 = vmatprep.subr.bf16.mxu0 %v4594_v40 }
 0x3a6   :  { %4505 = vmatpush3.bf16.msra.mxu0 %v4504_v4 }
 0x3a7   :  { %4506 = vmatprep.subr.bf16.mxu0 %v4594_v40 }
 0x3aa   :  { %4508 = vmatpush3.bf16.msra.mxu0 %v4507_v12 }
 0x45f   :  { %v3231_v8 = vpop.f32.mrb[82].mxu0  ;;  %v3302_v30 = vpop.f32.mrb[80].mxu1 }
 0x460   :  { %v4525_v39 = vadd.f32 %v3231_v8, %v2630_v53  ;;  %v3233_v5 = vpop.f32.mrb[83].mxu0  ;;  %v3304_v19 = vpop.f32.mrb[81].mxu1  ;;  %v4527_v24 = vadd.f32 %v3302_v30, %v2638_v60 }
 0x461   :  { %v4526_v20 = vadd.f32 %v3233_v5, %v2634_v11  ;;  %v4528_v51 = vadd.f32 %v3304_v19, %v2642_v47 }
 0x462   :  { %v3311_v40 = vsub.f32 0.0, %v4525_v39 }
 0x463   :  { %v3317_v13 = vsub.f32 0.0, %v4526_v20  ;;  %v3324_v23 = vsub.f32 0.0, %v4528_v51 }
 0x464   :  { %v3312_v56 = vmul.f32 1.442695, %v3311_v40 }
 0x465   :  { %v3318_v0 = vmul.f32 1.442695, %v3317_v13  ;;  %v3325_v41 = vmul.f32 1.442695, %v3324_v23 }
 0x466   :  { %4552 = vpow2.f32 %v3312_v56 }
 0x467   :  { %4554 = vpow2.f32 %v3318_v0 }
 0x468   :  { %4556 = vpow2.f32 %v3325_v41 }
 0x469   :  { %4558 = vtanh.f32 %v4527_v24 }
 0x470   :  { %v4553_v37 = vpop.eup %4552 }
 0x471   :  { %v4555_v25 = vpop.eup %4554  ;;  %v3314_v18 = vadd.f32 1.0, %v4553_v37 }
 0x472   :  { %v3320_v54 = vadd.f32 1.0, %v4555_v25  ;;  %v4557_v26 = vpop.eup %4556 }
 0x473   :  { %4560 = vrcp.f32 %v3314_v18  ;;  %v4559_v27 = vpop.eup %4558  ;;  %v3327_v34 = vadd.f32 1.0, %v4557_v26 }
 0x474   :  { %4562 = vrcp.f32 %v3320_v54 }
 0x475   :  { %4564 = vrcp.f32 %v3327_v34 }
 0x47d   :  { %v4561_v2 = vpop.eup %4560 }
 0x47e   :  { %v4563_v46 = vpop.eup %4562  ;;  %v3332_v57 = vmul.f32 %v4561_v2, %v4559_v27 }
 0x47f   :  { %v3331_v32 = vmul.f32 %v4563_v46, %v3330_v29  ;;  %v4565_v63 = vpop.eup %4564 }
 0x481   :  { %v3333_v48 = vadd.f32 %v3332_v57, %v3331_v32 }
 0x483   :  { %3509 = vst [vmem:[%s6125_s11] sm:$0x3] %v3333_v48  ;;  %4566 = vtanh.f32 %v3333_v48 }
 0x48d   :  { %v4567_v59 = vpop.eup %4566 }
 0x48e   :  { %v3335_v52 = vmul.f32 %v4567_v59, %v4565_v63 }
 0x490   :  { %4238 = vmatmul.mubr.f32.vlgmr.msra.gmra.mrb[84].mxu0 %v3335_v52  ;;  %3508 = vst [vmem:[%s6124_s10] sm:$0x3] %v3335_v52 }
 0x563   :  { %v3419_v42 = vpop.f32.mrb[84].mxu0 }
 0x564   :  { %v3420_v43 = vadd.f32 %v3419_v42, %v3352_v62  ;;  %v4239_v14 = vpop.f32.mrb[85].mxu0 }
 0x566   :  { %v3423_v16 = vmax.f32 %v3420_v43, 0.0 }
 0x568   :  { %4257 = vmatmul.mubr.msk.f32.vlgmr.msra.gmra.mrb[82].mxu1 %vm3433_vm3, %v3423_v16 }
 0x63b   :  { %v3503_v7 = vpop.f32.mrb[82].mxu1 }
 0x63c   :  { %v3504_v9 = vadd.f32 %v3503_v7, %v3432_v44  ;;  %v4258_v49 = vpop.f32.mrb[83].mxu1 }
 0x63e   :  { %3507 = vst [vmem:[#allocation3] sm:$0x3] %v3504_v9 }
 0x63f   :  { %4579 = shalt.err (!%p4576_p4)
}
 0x640   :  { %s4580_s22 = scalar_lea.hbm %s6123_s9, 32 }
 0x641   :  { %p4581_p5 = scmp.ne.s32.totalorder %s6123_s9, %s4580_s22  ;;  %p4584_p6 = scmp.lt.u32.totalorder %s4580_s22, %s6123_s9 }
 0x643   :  { %p4586_p7 = pnand %p4584_p6, %p4581_p5 }
 0x645   :  { %4589 = shalt.err (!%p4586_p7)
}
 0x646   :  { %3519 = dma.vmem_to_hbm [thread:$0]  %s3517_s19, 32, %s6123_s9, [#allocation4]  }
 0x647   :  { %4590 = dma.done.wait [#allocation4], 32  }
 0x648   :  { %4591 = vsyncadd [#allocation4], 4294967264 }
 0x649   :  { %3531 = vsyncpa [#allocation4], 1 }

</bundles_post_ra>
